<compile_context>
chip_gen: v7x
topology: tpu7x:2x2x1
jax: 0.10.0
libtpu: 0.0.40
codegen_flags: <defaults>
</compile_context>

<pallas_src>
import functools

import jax
import jax.numpy as jnp
from jax.experimental import pallas as pl
from jax.experimental.pallas import tpu as pltpu

LATENT_DIMS = 2
HIDDEN = 512
IMG = 28 * 28          # 784
IMG_PAD = 896          # 7 * 128  (lane-dense image width)
TB_MAX = 256           # batch tile (matches the 256x256 MXU on v6e/v7x)


def _round_up(x, m):
    return ((x + m - 1) // m) * m


def vae_kernel(x_ref, eps_ref,
               w1_ref, b1_ref,        # encoder linear1: 896(pad of 784) -> 512, bf16 weight
               w23_ref, b23_ref,      # fused encoder heads: 512 -> 2*latent (mu | log_sigma)
               wd1_ref, bd1_ref,      # decoder linear1: latent -> 512
               wd2_ref, bd2_ref,      # decoder linear2: 512 -> 896(pad of 784), bf16 weight
               recon_ref, kl_ref,
               *, batch):
    tb = x_ref.shape[0]

    # ----- Encoder -----
    x_bf = x_ref[...].astype(jnp.bfloat16)                              # (TB, 896)
    h = jnp.dot(x_bf, w1_ref[...], preferred_element_type=jnp.float32) + b1_ref[...]
    h = jnp.maximum(h, 0.0)                                             # ReLU, (TB, 512) f32

    # Fused mu / log_sigma projection, then slice.
    ml = jnp.dot(h, w23_ref[...], preferred_element_type=jnp.float32) + b23_ref[...]
    mu = ml[:, :LATENT_DIMS]                                            # (TB, latent)
    log_sigma = ml[:, LATENT_DIMS:2 * LATENT_DIMS]                      # (TB, latent)
    sigma = jnp.exp(log_sigma)

    # Reparameterization: z = mu + sigma * eps  (eps ~ N(0,1), sampled outside).
    z = mu + sigma * eps_ref[...]

    # KL term (the PyTorch encoder's `self.kl`), with batch-padding rows masked.
    # log(sigma) == log_sigma exactly; sigma^2 == exp(2*log_sigma).
    kl_elems = jnp.exp(2.0 * log_sigma) + mu * mu - log_sigma - 0.5
    row = (pl.program_id(0) * tb
           + jax.lax.broadcasted_iota(jnp.int32, kl_elems.shape, 0))
    kl_elems = jnp.where(row < batch, kl_elems, 0.0)
    kl_ref[...] = jnp.sum(kl_elems).reshape(1, 1)

    # ----- Decoder -----
    # linear1 has K = latent = 2: two broadcast FMAs on the VPU, no MXU pass.
    hd = bd1_ref[...]                                                   # (1, 512)
    for l in range(LATENT_DIMS):
        hd = hd + z[:, l:l + 1] * wd1_ref[l:l + 1, :]
    hd = jnp.maximum(hd, 0.0)                                           # ReLU, (TB, 512)

    logits = (jnp.dot(hd.astype(jnp.bfloat16), wd2_ref[...],
                      preferred_element_type=jnp.float32) + bd2_ref[...])
    # Numerically stable sigmoid on the EUP: sigmoid(x) = 0.5*(tanh(x/2)+1).
    recon_ref[...] = 0.5 * (jnp.tanh(0.5 * logits) + 1.0)               # (TB, 896)


def vae_forward(x_nchw, eps, params):
    """x_nchw: (B,1,28,28) f32, eps: (B,latent) f32 -> ((B,1,28,28) recon, scalar kl)."""
    B = x_nchw.shape[0]
    x_flat = x_nchw.reshape(B, IMG).astype(jnp.float32)

    TB = min(TB_MAX, _round_up(B, 8))
    Bp = _round_up(B, TB)
    G = Bp // TB

    # Pad batch to a tile multiple and image dim to 896 lanes (zeros).
    x_p = jnp.zeros((Bp, IMG_PAD), jnp.float32).at[:B, :IMG].set(x_flat)
    eps_p = jnp.zeros((Bp, LATENT_DIMS), jnp.float32).at[:B].set(eps)

    w1, b1, w23, b23, wd1, bd1, wd2, bd2 = params

    def batched(shape):      # per-grid-step batch tile
        return pl.BlockSpec(shape, lambda i: (i, 0))

    def resident(arr):       # whole array, VMEM-resident across all grid steps
        return pl.BlockSpec(arr.shape, lambda i: (0, 0))

    recon_p, kl_parts = pl.pallas_call(
        functools.partial(vae_kernel, batch=B),
        out_shape=(
            jax.ShapeDtypeStruct((Bp, IMG_PAD), jnp.float32),
            jax.ShapeDtypeStruct((G, 1), jnp.float32),
        ),
        grid=(G,),
        in_specs=[
            batched((TB, IMG_PAD)),
            batched((TB, LATENT_DIMS)),
            resident(w1), resident(b1),
            resident(w23), resident(b23),
            resident(wd1), resident(bd1),
            resident(wd2), resident(bd2),
        ],
        out_specs=(
            batched((TB, IMG_PAD)),
            pl.BlockSpec((1, 1), lambda i: (i, 0)),
        ),
        compiler_params=pltpu.CompilerParams(
            dimension_semantics=("parallel",)),
    )(x_p, eps_p, w1, b1, w23, b23, wd1, bd1, wd2, bd2)

    recon = recon_p[:B, :IMG].reshape(B, 1, 28, 28)
    kl = jnp.sum(kl_parts)
    return recon, kl


def init_linear(key, fan_in, fan_out):
    """Mimics torch.nn.Linear default init (uniform +-1/sqrt(fan_in)); weight
    stored transposed as (fan_in, fan_out)."""
    k = 1.0 / (fan_in ** 0.5)
    kw, kb = jax.random.split(key)
    w = jax.random.uniform(kw, (fan_in, fan_out), jnp.float32, -k, k)
    b = jax.random.uniform(kb, (1, fan_out), jnp.float32, -k, k)
    return w, b


def prepare_params(w1, b1, w2, b2, w3, b3, wd1, bd1, wd2, bd2):
    """Pad / fuse / cast the (in,out)-layout params for the kernel."""
    # Encoder linear1: pad contraction dim 784 -> 896 with zero rows, cast bf16.
    w1p = jnp.zeros((IMG_PAD, HIDDEN), jnp.float32).at[:IMG].set(w1).astype(jnp.bfloat16)
    # Fused mu | log_sigma head (f32, tiny).
    w23 = jnp.concatenate([w2, w3], axis=1)            # (512, 2*latent)
    b23 = jnp.concatenate([b2, b3], axis=1)            # (1, 2*latent)
    # Decoder linear2: pad output dim 784 -> 896 with zero cols, cast bf16.
    wd2p = jnp.zeros((HIDDEN, IMG_PAD), jnp.float32).at[:, :IMG].set(wd2).astype(jnp.bfloat16)
    bd2p = jnp.zeros((1, IMG_PAD), jnp.float32).at[:, :IMG].set(bd2)
    return (w1p, b1, w23, b23, wd1, bd1, wd2p, bd2p)


if __name__ == "__main__":
    key = jax.random.PRNGKey(0)
    k_x, k_eps, k1, k2, k3, k4, k5 = jax.random.split(key, 7)

    # Encoder: 784->512, 512->2 (mu), 512->2 (log sigma); Decoder: 2->512, 512->784.
    w1, b1 = init_linear(k1, IMG, HIDDEN)
    w2, b2 = init_linear(k2, HIDDEN, LATENT_DIMS)
    w3, b3 = init_linear(k3, HIDDEN, LATENT_DIMS)
    wd1, bd1 = init_linear(k4, LATENT_DIMS, HIDDEN)
    wd2, bd2 = init_linear(k5, HIDDEN, IMG)
    params = prepare_params(w1, b1, w2, b2, w3, b3, wd1, bd1, wd2, bd2)

    # Small deterministic inputs: batch=2, NCHW MNIST-shaped images.
    B = 2
    x = jax.random.normal(k_x, (B, 1, 28, 28), jnp.float32)
    # Reparameterization noise (replaces torch.distributions.Normal(0,1).sample()).
    eps = jax.random.normal(k_eps, (B, LATENT_DIMS), jnp.float32)

    recon, kl = vae_forward(x, eps, params)
    recon = jax.block_until_ready(recon)
    kl = jax.block_until_ready(kl)

    assert recon.shape == (B, 1, 28, 28)
    assert recon.dtype == jnp.float32
    assert bool(jnp.isfinite(kl))
    assert bool(jnp.all(jnp.isfinite(recon)))
    print("KERNEL_OK")
</pallas_src>

<mosaic_0001>
module attributes {stable_mosaic.version = 11 : i64} {
  func.func @vae_kernel(%arg0: i32, %arg1: memref<8x896xf32, #tpu.memory_space<vmem>>, %arg2: memref<8x2xf32, #tpu.memory_space<vmem>>, %arg3: memref<896x512xbf16, #tpu.memory_space<vmem>>, %arg4: memref<1x512xf32, #tpu.memory_space<vmem>>, %arg5: memref<512x4xf32, #tpu.memory_space<vmem>>, %arg6: memref<1x4xf32, #tpu.memory_space<vmem>>, %arg7: memref<2x512xf32, #tpu.memory_space<vmem>>, %arg8: memref<1x512xf32, #tpu.memory_space<vmem>>, %arg9: memref<512x896xbf16, #tpu.memory_space<vmem>>, %arg10: memref<1x896xf32, #tpu.memory_space<vmem>>, %arg11: memref<8x896xf32, #tpu.memory_space<vmem>>, %arg12: memref<1x1xf32, #tpu.memory_space<vmem>>) attributes {dimension_semantics = [#tpu.dimension_semantics<parallel>], iteration_bounds = array<i64: 1>, scalar_prefetch = 0 : i64, scratch_operands = 0 : i64, tpu.core_type = #tpu.core_type<tc>, window_params = [{transform_indices = @transform_0, window_bounds = array<i64: 8, 896>}, {transform_indices = @transform_1, window_bounds = array<i64: 8, 2>}, {pipeline_mode = #tpu.pipeline_mode<synchronous>, transform_indices = @transform_2, window_bounds = array<i64: 896, 512>}, {pipeline_mode = #tpu.pipeline_mode<synchronous>, transform_indices = @transform_3, window_bounds = array<i64: 1, 512>}, {pipeline_mode = #tpu.pipeline_mode<synchronous>, transform_indices = @transform_4, window_bounds = array<i64: 512, 4>}, {pipeline_mode = #tpu.pipeline_mode<synchronous>, transform_indices = @transform_5, window_bounds = array<i64: 1, 4>}, {pipeline_mode = #tpu.pipeline_mode<synchronous>, transform_indices = @transform_6, window_bounds = array<i64: 2, 512>}, {pipeline_mode = #tpu.pipeline_mode<synchronous>, transform_indices = @transform_7, window_bounds = array<i64: 1, 512>}, {pipeline_mode = #tpu.pipeline_mode<synchronous>, transform_indices = @transform_8, window_bounds = array<i64: 512, 896>}, {pipeline_mode = #tpu.pipeline_mode<synchronous>, transform_indices = @transform_9, window_bounds = array<i64: 1, 896>}, {transform_indices = @transform_10, window_bounds = array<i64: 8, 896>}, {transform_indices = @transform_11, window_bounds = array<i64: 1, 1>}]} {
    %c0 = arith.constant 0 : index
    %c0_0 = arith.constant 0 : index
    %0 = vector.load %arg1[%c0, %c0_0] : memref<8x896xf32, #tpu.memory_space<vmem>>, vector<8x896xf32>
    %1 = arith.truncf %0 : vector<8x896xf32> to vector<8x896xbf16>
    %c0_1 = arith.constant 0 : index
    %c0_2 = arith.constant 0 : index
    %2 = vector.load %arg3[%c0_1, %c0_2] : memref<896x512xbf16, #tpu.memory_space<vmem>>, vector<896x512xbf16>
    %cst = arith.constant dense<0.000000e+00> : vector<8x512xf32>
    %3 = tpu.matmul %1, %2, %cst {dimension_numbers = #tpu.dot_dimension_numbers<[1], [0], [0], [1], [0, 0, 1, 1], [], []>} : vector<8x896xbf16>, vector<896x512xbf16>, vector<8x512xf32> -> vector<8x512xf32>
    %c0_3 = arith.constant 0 : index
    %c0_4 = arith.constant 0 : index
    %4 = vector.load %arg4[%c0_3, %c0_4] : memref<1x512xf32, #tpu.memory_space<vmem>>, vector<1x512xf32>
    %5 = vector.broadcast %4 : vector<1x512xf32> to vector<8x512xf32>
    %6 = arith.addf %3, %5 : vector<8x512xf32>
    %cst_5 = arith.constant 0.000000e+00 : f32
    %7 = vector.broadcast %cst_5 : f32 to vector<8x512xf32>
    %8 = arith.maximumf %6, %7 : vector<8x512xf32>
    %c0_6 = arith.constant 0 : index
    %c0_7 = arith.constant 0 : index
    %9 = vector.load %arg5[%c0_6, %c0_7] : memref<512x4xf32, #tpu.memory_space<vmem>>, vector<512x4xf32>
    %cst_8 = arith.constant dense<0.000000e+00> : vector<8x4xf32>
    %10 = tpu.matmul %8, %9, %cst_8 {dimension_numbers = #tpu.dot_dimension_numbers<[1], [0], [0], [1], [0, 0, 1, 1], [], []>} : vector<8x512xf32>, vector<512x4xf32>, vector<8x4xf32> -> vector<8x4xf32>
    %c0_9 = arith.constant 0 : index
    %c0_10 = arith.constant 0 : index
    %11 = vector.load %arg6[%c0_9, %c0_10] : memref<1x4xf32, #tpu.memory_space<vmem>>, vector<1x4xf32>
    %12 = vector.broadcast %11 : vector<1x4xf32> to vector<8x4xf32>
    %13 = arith.addf %10, %12 : vector<8x4xf32>
    %14 = vector.extract_strided_slice %13 {offsets = [0, 0], sizes = [8, 2], strides = [1, 1]} : vector<8x4xf32> to vector<8x2xf32>
    %15 = vector.extract_strided_slice %13 {offsets = [0, 2], sizes = [8, 2], strides = [1, 1]} : vector<8x4xf32> to vector<8x2xf32>
    %16 = math.exp %15 : vector<8x2xf32>
    %c0_11 = arith.constant 0 : index
    %c0_12 = arith.constant 0 : index
    %17 = vector.load %arg2[%c0_11, %c0_12] : memref<8x2xf32, #tpu.memory_space<vmem>>, vector<8x2xf32>
    %18 = arith.mulf %16, %17 : vector<8x2xf32>
    %19 = arith.addf %14, %18 : vector<8x2xf32>
    %cst_13 = arith.constant 2.000000e+00 : f32
    %20 = vector.broadcast %cst_13 : f32 to vector<8x2xf32>
    %21 = arith.mulf %20, %15 : vector<8x2xf32>
    %22 = math.exp %21 : vector<8x2xf32>
    %23 = arith.mulf %14, %14 : vector<8x2xf32>
    %24 = arith.addf %22, %23 : vector<8x2xf32>
    %25 = arith.subf %24, %15 : vector<8x2xf32>
    %cst_14 = arith.constant 5.000000e-01 : f32
    %26 = vector.broadcast %cst_14 : f32 to vector<8x2xf32>
    %27 = arith.subf %25, %26 : vector<8x2xf32>
    %c8_i32 = arith.constant 8 : i32
    %28 = arith.muli %arg0, %c8_i32 : i32
    %29 = tpu.iota {dimensions = array<i32: 0>} : vector<8x2xi32>
    %30 = vector.broadcast %28 : i32 to vector<8x2xi32>
    %31 = arith.addi %30, %29 : vector<8x2xi32>
    %c2_i32 = arith.constant 2 : i32
    %32 = vector.broadcast %c2_i32 : i32 to vector<8x2xi32>
    %33 = arith.cmpi slt, %31, %32 : vector<8x2xi32>
    %cst_15 = arith.constant 0.000000e+00 : f32
    %34 = vector.broadcast %cst_15 : f32 to vector<8x2xf32>
    %35 = arith.select %33, %27, %34 : vector<8x2xi1>, vector<8x2xf32>
    %36 = vector.shape_cast %35 : vector<8x2xf32> to vector<1x8x2xf32>
    %cst_16 = arith.constant dense<0.000000e+00> : vector<1xf32>
    %37 = vector.multi_reduction <add>, %36, %cst_16 [1, 2] : vector<1x8x2xf32> to vector<1xf32>
    %38 = vector.shape_cast %37 : vector<1xf32> to vector<1x1x1xf32>
    %39 = vector.extract %38[0, 0, 0] : f32 from vector<1x1x1xf32>
    %40 = vector.broadcast %39 : f32 to vector<1x1xf32>
    %c0_17 = arith.constant 0 : index
    %c0_18 = arith.constant 0 : index
    %41 = vector.load %arg12[%c0_17, %c0_18] : memref<1x1xf32, #tpu.memory_space<vmem>>, vector<1x1xf32>
    tpu.vector_store %arg12[%c0_17, %c0_18], %40 {strides = array<i32>} : memref<1x1xf32, #tpu.memory_space<vmem>>, vector<1x1xf32>,
    %c0_19 = arith.constant 0 : index
    %c0_20 = arith.constant 0 : index
    %42 = vector.load %arg8[%c0_19, %c0_20] : memref<1x512xf32, #tpu.memory_space<vmem>>, vector<1x512xf32>
    %43 = vector.extract_strided_slice %19 {offsets = [0, 0], sizes = [8, 1], strides = [1, 1]} : vector<8x2xf32> to vector<8x1xf32>
    %c0_21 = arith.constant 0 : index
    %c0_22 = arith.constant 0 : index
    %44 = vector.load %arg7[%c0_21, %c0_22] : memref<2x512xf32, #tpu.memory_space<vmem>>, vector<1x512xf32>
    %45 = vector.broadcast %43 : vector<8x1xf32> to vector<8x512xf32>
    %46 = vector.broadcast %44 : vector<1x512xf32> to vector<8x512xf32>
    %47 = arith.mulf %45, %46 : vector<8x512xf32>
    %48 = vector.broadcast %42 : vector<1x512xf32> to vector<8x512xf32>
    %49 = arith.addf %48, %47 : vector<8x512xf32>
    %50 = vector.extract_strided_slice %19 {offsets = [0, 1], sizes = [8, 1], strides = [1, 1]} : vector<8x2xf32> to vector<8x1xf32>
    %c1 = arith.constant 1 : index
    %c0_23 = arith.constant 0 : index
    %51 = vector.load %arg7[%c1, %c0_23] : memref<2x512xf32, #tpu.memory_space<vmem>>, vector<1x512xf32>
    %52 = vector.broadcast %50 : vector<8x1xf32> to vector<8x512xf32>
    %53 = vector.broadcast %51 : vector<1x512xf32> to vector<8x512xf32>
    %54 = arith.mulf %52, %53 : vector<8x512xf32>
    %55 = arith.addf %49, %54 : vector<8x512xf32>
    %cst_24 = arith.constant 0.000000e+00 : f32
    %56 = vector.broadcast %cst_24 : f32 to vector<8x512xf32>
    %57 = arith.maximumf %55, %56 : vector<8x512xf32>
    %58 = arith.truncf %57 : vector<8x512xf32> to vector<8x512xbf16>
    %c0_25 = arith.constant 0 : index
    %c0_26 = arith.constant 0 : index
    %59 = vector.load %arg9[%c0_25, %c0_26] : memref<512x896xbf16, #tpu.memory_space<vmem>>, vector<512x896xbf16>
    %cst_27 = arith.constant dense<0.000000e+00> : vector<8x896xf32>
    %60 = tpu.matmul %58, %59, %cst_27 {dimension_numbers = #tpu.dot_dimension_numbers<[1], [0], [0], [1], [0, 0, 1, 1], [], []>} : vector<8x512xbf16>, vector<512x896xbf16>, vector<8x896xf32> -> vector<8x896xf32>
    %c0_28 = arith.constant 0 : index
    %c0_29 = arith.constant 0 : index
    %61 = vector.load %arg10[%c0_28, %c0_29] : memref<1x896xf32, #tpu.memory_space<vmem>>, vector<1x896xf32>
    %62 = vector.broadcast %61 : vector<1x896xf32> to vector<8x896xf32>
    %63 = arith.addf %60, %62 : vector<8x896xf32>
    %cst_30 = arith.constant 5.000000e-01 : f32
    %64 = vector.broadcast %cst_30 : f32 to vector<8x896xf32>
    %65 = arith.mulf %64, %63 : vector<8x896xf32>
    %66 = math.tanh %65 : vector<8x896xf32>
    %cst_31 = arith.constant 1.000000e+00 : f32
    %67 = vector.broadcast %cst_31 : f32 to vector<8x896xf32>
    %68 = arith.addf %66, %67 : vector<8x896xf32>
    %cst_32 = arith.constant 5.000000e-01 : f32
    %69 = vector.broadcast %cst_32 : f32 to vector<8x896xf32>
    %70 = arith.mulf %69, %68 : vector<8x896xf32>
    %c0_33 = arith.constant 0 : index
    %c0_34 = arith.constant 0 : index
    %71 = vector.load %arg11[%c0_33, %c0_34] : memref<8x896xf32, #tpu.memory_space<vmem>>, vector<8x896xf32>
    tpu.vector_store %arg11[%c0_33, %c0_34], %70 {strides = array<i32>} : memref<8x896xf32, #tpu.memory_space<vmem>>, vector<8x896xf32>,
    return
  }
  func.func @transform_0(%arg0: i32) -> (i32, i32) {
    %c0_i32 = arith.constant 0 : i32
    %c0_i32_0 = arith.constant 0 : i32
    return %arg0, %c0_i32 : i32, i32
  }
  func.func @transform_1(%arg0: i32) -> (i32, i32) {
    %c0_i32 = arith.constant 0 : i32
    %c0_i32_0 = arith.constant 0 : i32
    return %arg0, %c0_i32 : i32, i32
  }
  func.func @transform_2(%arg0: i32) -> (i32, i32) {
    %c0_i32 = arith.constant 0 : i32
    %c0_i32_0 = arith.constant 0 : i32
    %c0_i32_1 = arith.constant 0 : i32
    return %c0_i32, %c0_i32_0 : i32, i32
  }
  func.func @transform_3(%arg0: i32) -> (i32, i32) {
    %c0_i32 = arith.constant 0 : i32
    %c0_i32_0 = arith.constant 0 : i32
    %c0_i32_1 = arith.constant 0 : i32
    return %c0_i32, %c0_i32_0 : i32, i32
  }
  func.func @transform_4(%arg0: i32) -> (i32, i32) {
    %c0_i32 = arith.constant 0 : i32
    %c0_i32_0 = arith.constant 0 : i32
    %c0_i32_1 = arith.constant 0 : i32
    return %c0_i32, %c0_i32_0 : i32, i32
  }
  func.func @transform_5(%arg0: i32) -> (i32, i32) {
    %c0_i32 = arith.constant 0 : i32
    %c0_i32_0 = arith.constant 0 : i32
    %c0_i32_1 = arith.constant 0 : i32
    return %c0_i32, %c0_i32_0 : i32, i32
  }
  func.func @transform_6(%arg0: i32) -> (i32, i32) {
    %c0_i32 = arith.constant 0 : i32
    %c0_i32_0 = arith.constant 0 : i32
    %c0_i32_1 = arith.constant 0 : i32
    return %c0_i32, %c0_i32_0 : i32, i32
  }
  func.func @transform_7(%arg0: i32) -> (i32, i32) {
    %c0_i32 = arith.constant 0 : i32
    %c0_i32_0 = arith.constant 0 : i32
    %c0_i32_1 = arith.constant 0 : i32
    return %c0_i32, %c0_i32_0 : i32, i32
  }
  func.func @transform_8(%arg0: i32) -> (i32, i32) {
    %c0_i32 = arith.constant 0 : i32
    %c0_i32_0 = arith.constant 0 : i32
    %c0_i32_1 = arith.constant 0 : i32
    return %c0_i32, %c0_i32_0 : i32, i32
  }
  func.func @transform_9(%arg0: i32) -> (i32, i32) {
    %c0_i32 = arith.constant 0 : i32
    %c0_i32_0 = arith.constant 0 : i32
    %c0_i32_1 = arith.constant 0 : i32
    return %c0_i32, %c0_i32_0 : i32, i32
  }
  func.func @transform_10(%arg0: i32) -> (i32, i32) {
    %c0_i32 = arith.constant 0 : i32
    %c0_i32_0 = arith.constant 0 : i32
    return %arg0, %c0_i32 : i32, i32
  }
  func.func @transform_11(%arg0: i32) -> (i32, i32) {
    %c0_i32 = arith.constant 0 : i32
    %c0_i32_0 = arith.constant 0 : i32
    return %arg0, %c0_i32 : i32, i32
  }
}

</mosaic_0001>

<bundles_post_ra>
// kernel: tpu_custom_call.1
= control target key start
LH: loop header
LB: loop body
LE: loop exit
PB: predicated region body
PF: predicated region fallthrough
CT: control target
= control target key end

     0   :  { %17 = vsyncpa [#allocation3], 0  ;;  %s5907_s0 = inlined_call_operand.vmem [shape: f32[8,896], index: 0, kind: input, shape index: {}]   ;;  %s5908_s1 = inlined_call_operand.vmem [shape: f32[8,2], index: 1, kind: input, shape index: {}]   ;;  %s5909_s2 = inlined_call_operand.hbm [shape: bf16[896,512], index: 2, kind: input, shape index: {}]   ;;  %s5910_s3 = inlined_call_operand.vmem [shape: f32[1,512], index: 3, kind: input, shape index: {}]   ;;  %s5911_s4 = inlined_call_operand.vmem [shape: f32[512,4], index: 4, kind: input, shape index: {}]   ;;  %s5912_s5 = inlined_call_operand.vmem [shape: f32[1,4], index: 5, kind: input, shape index: {}]   ;;  %s5913_s6 = inlined_call_operand.vmem [shape: f32[2,512], index: 6, kind: input, shape index: {}]   ;;  %s5914_s7 = inlined_call_operand.vmem [shape: f32[1,512], index: 7, kind: input, shape index: {}]   ;;  %s5915_s8 = inlined_call_operand.hbm [shape: bf16[512,896], index: 8, kind: input, shape index: {}]   ;;  %s5916_s9 = inlined_call_operand.vmem [shape: f32[1,896], index: 9, kind: input, shape index: {}]   ;;  %s5917_s10 = inlined_call_operand.hbm [shape: f32[8,896], index: 10, kind: output, shape index: {0}]   ;;  %s5918_s11 = inlined_call_operand.hbm [shape: f32[1,1], index: 11, kind: output, shape index: {1}]  }
   0x1   :  { %18 = vsyncpa [#allocation6], 0 }
   0x2   :  { %19 = vsyncpa [#allocation4], 0 }
   0x3   :  { %20 = vsyncpa [#allocation9], 0  ;;  %s5436_s17 = smov [#allocation2]   ;;  %s5340_s21 = scalar_lea.hbm %s5909_s2, 28672 }
   0x4   :  { %s30_s18 = sshll.u32 %s5436_s17, 4  ;;  %p5341_p0 = scmp.ne.s32.totalorder %s5909_s2, %s5340_s21  ;;  %s31_s18 = int_to_ptr.vmem [resolvable:$true] %s30_s18 }
   0x5   :  { %p5344_p1 = scmp.lt.u32.totalorder %s5340_s21, %s5909_s2 }
   0x7   :  { %p5346_p2 = pnand %p5344_p1, %p5341_p0 }
   0x9   :  { %5349 = shalt.err (!%p5346_p2)
}
   0xa   :  { %s5350_s26 = scalar_lea.vmem %s31_s18, 28672  ;;  %p5355_p4 = scmp.lt.s32.totalorder %s31_s18, %s31_s18 }
   0xb   :  { %p5351_p3 = scmp.ne.s32.totalorder %s31_s18, %s5350_s26  ;;  %p5356_p5 = scmp.lt.s32.totalorder %s5350_s26, %s5350_s26 }
   0xd   :  { %p5357_p6 = por %p5356_p5, %p5355_p4 }
   0xf   :  { %p5358_p7 = pnand %p5357_p6, %p5351_p3 }
  0x11   :  { %5361 = shalt.err (!%p5358_p7)
}
  0x12   :  { %s5437_s27 = smov 256   ;;  %s5438_s28 = smov 16  }
  0x13   :  { %36 = dma.hbm_to_vmem [thread:$0]  %s5909_s2, 28672, %s31_s18, [#allocation3], %s5437_s27, %s5437_s27, %s5438_s28  }
  0x14   :  { %s5439_s12 = smov [#allocation5]   ;;  %s5362_s16 = scalar_lea.hbm %s5915_s8, 28672 }
  0x15   :  { %s52_s13 = sshll.u32 %s5439_s12, 4  ;;  %p5363_p8 = scmp.ne.s32.totalorder %s5915_s8, %s5362_s16  ;;  %s53_s13 = int_to_ptr.vmem [resolvable:$true] %s52_s13 }
  0x16   :  { %p5366_p9 = scmp.lt.u32.totalorder %s5362_s16, %s5915_s8 }
  0x18   :  { %p5368_p10 = pnand %p5366_p9, %p5363_p8 }
  0x1a   :  { %5371 = shalt.err (!%p5368_p10)
}
  0x1b   :  { %s5372_s22 = scalar_lea.vmem %s53_s13, 28672  ;;  %p5377_p12 = scmp.lt.s32.totalorder %s53_s13, %s53_s13 }
  0x1c   :  { %p5373_p11 = scmp.ne.s32.totalorder %s53_s13, %s5372_s22  ;;  %p5378_p13 = scmp.lt.s32.totalorder %s5372_s22, %s5372_s22 }
  0x1e   :  { %p5379_p0 = por %p5378_p13, %p5377_p12 }
  0x20   :  { %p5380_p1 = pnand %p5379_p0, %p5373_p11 }
  0x22   :  { %5383 = shalt.err (!%p5380_p1)
}
  0x23   :  { %s5440_s2 = smov 448   ;;  %s5441_s18 = smov 28  }
  0x24   :  { %58 = dma.hbm_to_vmem [thread:$0]  %s5915_s8, 28672, %s53_s13, [#allocation6], %s5440_s2, %s5440_s2, %s5441_s18  }
  0x25   :  { %5428 = dma.done.wait [#allocation3], 28672  }
  0x26   :  { %5429 = vsyncadd [#allocation3], 4294938624 }
  0x27   :  { %5430 = dma.done.wait [#allocation6], 28672  }
  0x28   :  { %5431 = vsyncadd [#allocation6], 4294938624  ;;  %v5442_v0 = vmov 0   ;;  %v4666_v1 = vld [vmem:[#allocation2 + $0x4] ss:$16 sps:$4 sm:$0xff]   ;;  %v69_v49 = vld [vmem:[%s5907_s0 + $0x8] sm:$0xff] }
  0x29   :  { %1603 = vmatprep.mubr.bf16.mxu1 %v5442_v0  ;;  %4663 = vset.pattern.permute.xlu1 %v5442_v0  ;;  %v4668_v2 = vld [vmem:[#allocation2 + $0x604] ss:$16 sps:$4 sm:$0xff]   ;;  %v4670_v3 = vld [vmem:[#allocation2] ss:$16 sps:$4 sm:$0xff]   ;;  %v4718_v35 = vld [vmem:[#allocation2 + $0xc] ss:$16 sps:$4 sm:$0xff]   ;;  %v76_v52 = vpack.c.bf16 %v69_v49, %v69_v49 }
  0x2a   :  { %1448 = vmatprep.subr.bf16.mxu0 %v4666_v1  ;;  %v4671_v4 = vld [vmem:[#allocation2 + $0x600] ss:$16 sps:$4 sm:$0xff]   ;;  %1571 = vmatprep.subr.bf16.mxu1 %v4668_v2  ;;  %v4672_v5 = vld [vmem:[#allocation2 + $0x24] ss:$16 sps:$4 sm:$0xff]   ;;  %v4716_v37 = vld [vmem:[#allocation2 + $0x8] ss:$16 sps:$4 sm:$0xff]  }
  0x2b   :  { %1449 = vmatpush1.bf16.msra.mxu0 %v4670_v3  ;;  %1572 = vmatpush1.bf16.msra.mxu1 %v4671_v4  ;;  %v4674_v6 = vld [vmem:[#allocation2 + $0x624] ss:$16 sps:$4 sm:$0xff]   ;;  %v4676_v7 = vld [vmem:[#allocation2 + $0x20] ss:$16 sps:$4 sm:$0xff]   ;;  %v4724_v40 = vld [vmem:[#allocation2 + $0x2c] ss:$16 sps:$4 sm:$0xff]  }
  0x2c   :  { %1450 = vmatprep.subr.bf16.mxu0 %v4672_v5  ;;  %v4677_v8 = vld [vmem:[#allocation2 + $0x620] ss:$16 sps:$4 sm:$0xff]   ;;  %1573 = vmatprep.subr.bf16.mxu1 %v4674_v6  ;;  %v4678_v9 = vld [vmem:[#allocation2 + $0x44] ss:$16 sps:$4 sm:$0xff]   ;;  %v4722_v41 = vld [vmem:[#allocation2 + $0x28] ss:$16 sps:$4 sm:$0xff]  }
  0x2d   :  { %v4680_v10 = vld [vmem:[#allocation2 + $0x644] ss:$16 sps:$4 sm:$0xff]   ;;  %v4682_v11 = vld [vmem:[#allocation2 + $0x40] ss:$16 sps:$4 sm:$0xff]   ;;  %v4730_v44 = vld [vmem:[#allocation2 + $0x4c] ss:$16 sps:$4 sm:$0xff]   ;;  %1480 = vmatprep.mubr.bf16.mxu0 %v76_v52 }
  0x2e   :  { %v4683_v12 = vld [vmem:[#allocation2 + $0x640] ss:$16 sps:$4 sm:$0xff]   ;;  %v4684_v13 = vld [vmem:[#allocation2 + $0x64] ss:$16 sps:$4 sm:$0xff]   ;;  %v4728_v45 = vld [vmem:[#allocation2 + $0x48] ss:$16 sps:$4 sm:$0xff]  }
  0x2f   :  { %1451 = vmatpush1.bf16.msra.mxu0 %v4676_v7  ;;  %1574 = vmatpush1.bf16.msra.mxu1 %v4677_v8  ;;  %v4686_v14 = vld [vmem:[#allocation2 + $0x664] ss:$16 sps:$4 sm:$0xff]   ;;  %v4688_v15 = vld [vmem:[#allocation2 + $0x60] ss:$16 sps:$4 sm:$0xff]   ;;  %v4736_v48 = vld [vmem:[#allocation2 + $0x6c] ss:$16 sps:$4 sm:$0xff]  }
  0x30   :  { %1452 = vmatprep.subr.bf16.mxu0 %v4678_v9  ;;  %1575 = vmatprep.subr.bf16.mxu1 %v4680_v10  ;;  %v4689_v16 = vld [vmem:[#allocation2 + $0x660] ss:$16 sps:$4 sm:$0xff]   ;;  %v4690_v17 = vld [vmem:[#allocation2 + $0x84] ss:$16 sps:$4 sm:$0xff]   ;;  %v4734_v50 = vld [vmem:[#allocation2 + $0x68] ss:$16 sps:$4 sm:$0xff]  }
  0x31   :  { %v4692_v18 = vld [vmem:[#allocation2 + $0x684] ss:$16 sps:$4 sm:$0xff]   ;;  %v4694_v19 = vld [vmem:[#allocation2 + $0x80] ss:$16 sps:$4 sm:$0xff]   ;;  %v4742_v54 = vld [vmem:[#allocation2 + $0x8c] ss:$16 sps:$4 sm:$0xff]  }
  0x32   :  { %v4695_v20 = vld [vmem:[#allocation2 + $0x680] ss:$16 sps:$4 sm:$0xff]   ;;  %v4696_v21 = vld [vmem:[#allocation2 + $0xa4] ss:$16 sps:$4 sm:$0xff]   ;;  %v4740_v55 = vld [vmem:[#allocation2 + $0x88] ss:$16 sps:$4 sm:$0xff]  }
  0x33   :  { %1453 = vmatpush1.bf16.msra.mxu0 %v4682_v11  ;;  %1576 = vmatpush1.bf16.msra.mxu1 %v4683_v12  ;;  %v4698_v22 = vld [vmem:[#allocation2 + $0x6a4] ss:$16 sps:$4 sm:$0xff]   ;;  %v4700_v23 = vld [vmem:[#allocation2 + $0xa0] ss:$16 sps:$4 sm:$0xff]   ;;  %v4748_v58 = vld [vmem:[#allocation2 + $0xac] ss:$16 sps:$4 sm:$0xff]  }
  0x34   :  { %1454 = vmatprep.subr.bf16.mxu0 %v4684_v13  ;;  %1577 = vmatprep.subr.bf16.mxu1 %v4686_v14  ;;  %v4701_v24 = vld [vmem:[#allocation2 + $0x6a0] ss:$16 sps:$4 sm:$0xff]   ;;  %v4702_v25 = vld [vmem:[#allocation2 + $0xc4] ss:$16 sps:$4 sm:$0xff]   ;;  %v4746_v59 = vld [vmem:[#allocation2 + $0xa8] ss:$16 sps:$4 sm:$0xff]  }
  0x35   :  { %v4704_v26 = vld [vmem:[#allocation2 + $0x6c4] ss:$16 sps:$4 sm:$0xff]   ;;  %v4706_v27 = vld [vmem:[#allocation2 + $0xc0] ss:$16 sps:$4 sm:$0xff]   ;;  %v4754_v62 = vld [vmem:[#allocation2 + $0xcc] ss:$16 sps:$4 sm:$0xff]  }
  0x36   :  { %v4707_v28 = vld [vmem:[#allocation2 + $0x6c0] ss:$16 sps:$4 sm:$0xff]   ;;  %v4708_v29 = vld [vmem:[#allocation2 + $0xe4] ss:$16 sps:$4 sm:$0xff]   ;;  %v4752_v63 = vld [vmem:[#allocation2 + $0xc8] ss:$16 sps:$4 sm:$0xff]  }
  0x37   :  { %1455 = vmatpush1.bf16.msra.mxu0 %v4688_v15  ;;  %1578 = vmatpush1.bf16.msra.mxu1 %v4689_v16  ;;  %v4710_v30 = vld [vmem:[#allocation2 + $0x6e4] ss:$16 sps:$4 sm:$0xff]   ;;  %v4712_v31 = vld [vmem:[#allocation2 + $0xe0] ss:$16 sps:$4 sm:$0xff]   ;;  %v4760_v3 = vld [vmem:[#allocation2 + $0xec] ss:$16 sps:$4 sm:$0xff]  }
  0x38   :  { %1456 = vmatprep.subr.bf16.mxu0 %v4690_v17  ;;  %1579 = vmatprep.subr.bf16.mxu1 %v4692_v18  ;;  %v4713_v32 = vld [vmem:[#allocation2 + $0x6e0] ss:$16 sps:$4 sm:$0xff]   ;;  %v4714_v34 = vld [vmem:[#allocation2 + $0x104] ss:$16 sps:$4 sm:$0xff]   ;;  %v4758_v4 = vld [vmem:[#allocation2 + $0xe8] ss:$16 sps:$4 sm:$0xff]  }
  0x39   :  { %v74_v33 = vld [vmem:[%s5907_s0 + $0x30] sm:$0xff]  ;;  %v68_v7 = vld [vmem:[%s5907_s0] sm:$0xff]  ;;  %v4767_v8 = vld [vmem:[#allocation2 + $0x10c] ss:$16 sps:$4 sm:$0xff]   ;;  %s5443_s17 = smov 2   ;;  %vm2026_vm1 = vcmask 15360  }
  0x3a   :  { %v5537_v36 = vpack.c.bf16 %v74_v33, %v74_v33  ;;  %v4719_v38 = vld [vmem:[#allocation2 + $0x100] ss:$16 sps:$4 sm:$0xff]   ;;  %v4720_v39 = vld [vmem:[#allocation2 + $0x124] ss:$16 sps:$4 sm:$0xff]   ;;  %v5546_v10 = vpack.c.bf16 %v68_v7, %v68_v7  ;;  %v4765_v11 = vld [vmem:[#allocation2 + $0x108] ss:$16 sps:$4 sm:$0xff]  }
  0x3b   :  { %1457 = vmatpush1.bf16.msra.mxu0 %v4694_v19  ;;  %1580 = vmatpush1.bf16.msra.mxu1 %v4695_v20  ;;  %v4725_v42 = vld [vmem:[#allocation2 + $0x120] ss:$16 sps:$4 sm:$0xff]   ;;  %v4726_v43 = vld [vmem:[#allocation2 + $0x144] ss:$16 sps:$4 sm:$0xff]   ;;  %v4773_v13 = vld [vmem:[#allocation2 + $0x12c] ss:$16 sps:$4 sm:$0xff]  }
  0x3c   :  { %1458 = vmatprep.subr.bf16.mxu0 %v4696_v21  ;;  %1581 = vmatprep.subr.bf16.mxu1 %v4698_v22  ;;  %v4731_v46 = vld [vmem:[#allocation2 + $0x140] ss:$16 sps:$4 sm:$0xff]   ;;  %v4732_v47 = vld [vmem:[#allocation2 + $0x164] ss:$16 sps:$4 sm:$0xff]   ;;  %v4771_v15 = vld [vmem:[#allocation2 + $0x128] ss:$16 sps:$4 sm:$0xff]  }
  0x3d   :  { %v4737_v51 = vld [vmem:[#allocation2 + $0x160] ss:$16 sps:$4 sm:$0xff]   ;;  %v4738_v53 = vld [vmem:[#allocation2 + $0x184] ss:$16 sps:$4 sm:$0xff]   ;;  %v4779_v17 = vld [vmem:[#allocation2 + $0x14c] ss:$16 sps:$4 sm:$0xff]  }
  0x3e   :  { %v4743_v56 = vld [vmem:[#allocation2 + $0x180] ss:$16 sps:$4 sm:$0xff]   ;;  %v4744_v57 = vld [vmem:[#allocation2 + $0x1a4] ss:$16 sps:$4 sm:$0xff]   ;;  %v4777_v19 = vld [vmem:[#allocation2 + $0x148] ss:$16 sps:$4 sm:$0xff]  }
  0x3f   :  { %1459 = vmatpush1.bf16.msra.mxu0 %v4700_v23  ;;  %1582 = vmatpush1.bf16.msra.mxu1 %v4701_v24  ;;  %v4749_v60 = vld [vmem:[#allocation2 + $0x1a0] ss:$16 sps:$4 sm:$0xff]   ;;  %v4750_v61 = vld [vmem:[#allocation2 + $0x1c4] ss:$16 sps:$4 sm:$0xff]   ;;  %v4785_v21 = vld [vmem:[#allocation2 + $0x16c] ss:$16 sps:$4 sm:$0xff]  }
  0x40   :  { %1460 = vmatprep.subr.bf16.mxu0 %v4702_v25  ;;  %1583 = vmatprep.subr.bf16.mxu1 %v4704_v26  ;;  %v4755_v1 = vld [vmem:[#allocation2 + $0x1c0] ss:$16 sps:$4 sm:$0xff]   ;;  %v4756_v2 = vld [vmem:[#allocation2 + $0x1e4] ss:$16 sps:$4 sm:$0xff]   ;;  %v4783_v23 = vld [vmem:[#allocation2 + $0x168] ss:$16 sps:$4 sm:$0xff]  }
  0x41   :  { %v4761_v5 = vld [vmem:[#allocation2 + $0x1e0] ss:$16 sps:$4 sm:$0xff]   ;;  %v4764_v6 = vld [vmem:[#allocation2 + $0x204] ss:$16 sps:$4 sm:$0xff]   ;;  %v4791_v25 = vld [vmem:[#allocation2 + $0x18c] ss:$16 sps:$4 sm:$0xff]  }
  0x42   :  { %v4762_v9 = vld [vmem:[#allocation2 + $0x200] ss:$16 sps:$4 sm:$0xff]   ;;  %v4770_v12 = vld [vmem:[#allocation2 + $0x224] ss:$16 sps:$4 sm:$0xff]   ;;  %v4803_v33 = vld [vmem:[#allocation2 + $0x1cc] ss:$16 sps:$4 sm:$0xff]  }
  0x43   :  { %1461 = vmatpush1.bf16.msra.mxu0 %v4706_v27  ;;  %1584 = vmatpush1.bf16.msra.mxu1 %v4707_v28  ;;  %v4768_v14 = vld [vmem:[#allocation2 + $0x220] ss:$16 sps:$4 sm:$0xff]   ;;  %v4776_v16 = vld [vmem:[#allocation2 + $0x244] ss:$16 sps:$4 sm:$0xff]   ;;  %v4789_v27 = vld [vmem:[#allocation2 + $0x188] ss:$16 sps:$4 sm:$0xff]  }
  0x44   :  { %1462 = vmatprep.subr.bf16.mxu0 %v4708_v29  ;;  %1585 = vmatprep.subr.bf16.mxu1 %v4710_v30  ;;  %v4774_v18 = vld [vmem:[#allocation2 + $0x240] ss:$16 sps:$4 sm:$0xff]   ;;  %v4782_v20 = vld [vmem:[#allocation2 + $0x264] ss:$16 sps:$4 sm:$0xff]   ;;  %v4797_v29 = vld [vmem:[#allocation2 + $0x1ac] ss:$16 sps:$4 sm:$0xff]  }
  0x45   :  { %v4780_v22 = vld [vmem:[#allocation2 + $0x260] ss:$16 sps:$4 sm:$0xff]   ;;  %v4788_v24 = vld [vmem:[#allocation2 + $0x284] ss:$16 sps:$4 sm:$0xff]   ;;  %v4849_v7 = vld [vmem:[#allocation2 + $0x2c8] ss:$16 sps:$4 sm:$0xff]  }
  0x46   :  { %v4786_v26 = vld [vmem:[#allocation2 + $0x280] ss:$16 sps:$4 sm:$0xff]   ;;  %v4794_v28 = vld [vmem:[#allocation2 + $0x2a4] ss:$16 sps:$4 sm:$0xff]   ;;  %vm2038_vm2 = vcmask 0  }
  0x47   :  { %1463 = vmatpush1.bf16.msra.mxu0 %v4712_v31  ;;  %1586 = vmatpush1.bf16.msra.mxu1 %v4713_v32  ;;  %v4792_v30 = vld [vmem:[#allocation2 + $0x2a0] ss:$16 sps:$4 sm:$0xff]   ;;  %v4795_v31 = vld [vmem:[#allocation2 + $0x1a8] ss:$16 sps:$4 sm:$0xff]   ;;  %v4800_v32 = vld [vmem:[#allocation2 + $0x2c4] ss:$16 sps:$4 sm:$0xff]  }
  0x48   :  { %1464 = vmatprep.subr.bf16.mxu0 %v4714_v34  ;;  %1612 = vmatprep.subr.bf16.mxu1 %v4718_v35  ;;  %v71_v34 = vld [vmem:[%s5907_s0 + $0x18] sm:$0xff]  ;;  %v4798_v35 = vld [vmem:[#allocation2 + $0x2c0] ss:$16 sps:$4 sm:$0xff]  }
  0x49   :  { %v4816_v49 = vld [vmem:[#allocation2 + $0x320] ss:$16 sps:$4 sm:$0xff]  }
  0x4a   :  { %1604 = vmatmul.mubr.bf16.vlgmr.msra.gmra.mrb[0].mxu1 %v5537_v36 }
  0x4b   :  { %1465 = vmatpush1.bf16.msra.mxu0 %v4719_v38  ;;  %1613 = vmatpush1.bf16.msra.mxu1 %v4716_v37  ;;  %v78_v37 = vpack.c.bf16 %v71_v34, %v71_v34  ;;  %v4801_v38 = vld [vmem:[#allocation2 + $0x1c8] ss:$16 sps:$4 sm:$0xff]   ;;  %v4882_v34 = vld [vmem:[#allocation2 + $0x480] ss:$16 sps:$4 sm:$0xff]  }
  0x4c   :  { %1466 = vmatprep.subr.bf16.mxu0 %v4720_v39  ;;  %1614 = vmatprep.subr.bf16.mxu1 %v4724_v40  ;;  %v4806_v39 = vld [vmem:[#allocation2 + $0x2e4] ss:$16 sps:$4 sm:$0xff]   ;;  %v4809_v40 = vld [vmem:[#allocation2 + $0x1ec] ss:$16 sps:$4 sm:$0xff]  }
  0x4d   :  { %1644 = vmatprep.mubr.bf16.mxu1 %v76_v52  ;;  %v4827_v52 = vld [vmem:[#allocation2 + $0x24c] ss:$16 sps:$4 sm:$0xff]  }
  0x4f   :  { %1467 = vmatpush1.bf16.msra.mxu0 %v4725_v42  ;;  %1615 = vmatpush1.bf16.msra.mxu1 %v4722_v41  ;;  %v4804_v41 = vld [vmem:[#allocation2 + $0x2e0] ss:$16 sps:$4 sm:$0xff]   ;;  %v4807_v42 = vld [vmem:[#allocation2 + $0x1e8] ss:$16 sps:$4 sm:$0xff]  }
  0x50   :  { %1468 = vmatprep.subr.bf16.mxu0 %v4726_v43  ;;  %1616 = vmatprep.subr.bf16.mxu1 %v4730_v44  ;;  %v4812_v43 = vld [vmem:[#allocation2 + $0x304] ss:$16 sps:$4 sm:$0xff]   ;;  %v4815_v44 = vld [vmem:[#allocation2 + $0x20c] ss:$16 sps:$4 sm:$0xff]  }
  0x53   :  { %1469 = vmatpush1.bf16.msra.mxu0 %v4731_v46  ;;  %1617 = vmatpush1.bf16.msra.mxu1 %v4728_v45  ;;  %v4810_v45 = vld [vmem:[#allocation2 + $0x300] ss:$16 sps:$4 sm:$0xff]   ;;  %v4813_v46 = vld [vmem:[#allocation2 + $0x208] ss:$16 sps:$4 sm:$0xff]  }
  0x54   :  { %1470 = vmatprep.subr.bf16.mxu0 %v4732_v47  ;;  %1618 = vmatprep.subr.bf16.mxu1 %v4736_v48  ;;  %v4818_v47 = vld [vmem:[#allocation2 + $0x324] ss:$16 sps:$4 sm:$0xff]   ;;  %v4821_v48 = vld [vmem:[#allocation2 + $0x22c] ss:$16 sps:$4 sm:$0xff]  }
  0x57   :  { %1471 = vmatpush1.bf16.msra.mxu0 %v4737_v51  ;;  %1619 = vmatpush1.bf16.msra.mxu1 %v4734_v50  ;;  %v4819_v50 = vld [vmem:[#allocation2 + $0x228] ss:$16 sps:$4 sm:$0xff]   ;;  %v4824_v51 = vld [vmem:[#allocation2 + $0x344] ss:$16 sps:$4 sm:$0xff]  }
  0x58   :  { %1472 = vmatprep.subr.bf16.mxu0 %v4738_v53  ;;  %1620 = vmatprep.subr.bf16.mxu1 %v4742_v54  ;;  %v4822_v53 = vld [vmem:[#allocation2 + $0x340] ss:$16 sps:$4 sm:$0xff]   ;;  %v4825_v54 = vld [vmem:[#allocation2 + $0x248] ss:$16 sps:$4 sm:$0xff]  }
  0x5b   :  { %1473 = vmatpush1.bf16.msra.mxu0 %v4743_v56  ;;  %1621 = vmatpush1.bf16.msra.mxu1 %v4740_v55  ;;  %v4830_v55 = vld [vmem:[#allocation2 + $0x364] ss:$16 sps:$4 sm:$0xff]   ;;  %v4833_v56 = vld [vmem:[#allocation2 + $0x26c] ss:$16 sps:$4 sm:$0xff]  }
  0x5c   :  { %1474 = vmatprep.subr.bf16.mxu0 %v4744_v57  ;;  %1622 = vmatprep.subr.bf16.mxu1 %v4748_v58  ;;  %v4828_v57 = vld [vmem:[#allocation2 + $0x360] ss:$16 sps:$4 sm:$0xff]   ;;  %v4831_v58 = vld [vmem:[#allocation2 + $0x268] ss:$16 sps:$4 sm:$0xff]  }
  0x5f   :  { %1475 = vmatpush1.bf16.msra.mxu0 %v4749_v60  ;;  %1623 = vmatpush1.bf16.msra.mxu1 %v4746_v59  ;;  %v4836_v59 = vld [vmem:[#allocation2 + $0x384] ss:$16 sps:$4 sm:$0xff]   ;;  %v4839_v60 = vld [vmem:[#allocation2 + $0x28c] ss:$16 sps:$4 sm:$0xff]  }
  0x60   :  { %1476 = vmatprep.subr.bf16.mxu0 %v4750_v61  ;;  %1624 = vmatprep.subr.bf16.mxu1 %v4754_v62  ;;  %v4834_v61 = vld [vmem:[#allocation2 + $0x380] ss:$16 sps:$4 sm:$0xff]   ;;  %v4837_v62 = vld [vmem:[#allocation2 + $0x288] ss:$16 sps:$4 sm:$0xff]  }
  0x63   :  { %1477 = vmatpush1.bf16.msra.mxu0 %v4755_v1  ;;  %1625 = vmatpush1.bf16.msra.mxu1 %v4752_v63  ;;  %v4842_v63 = vld [vmem:[#allocation2 + $0x3a4] ss:$16 sps:$4 sm:$0xff]   ;;  %v4845_v1 = vld [vmem:[#allocation2 + $0x2ac] ss:$16 sps:$4 sm:$0xff]  }
  0x64   :  { %1478 = vmatprep.subr.bf16.mxu0 %v4756_v2  ;;  %1626 = vmatprep.subr.bf16.mxu1 %v4760_v3  ;;  %v4840_v2 = vld [vmem:[#allocation2 + $0x3a0] ss:$16 sps:$4 sm:$0xff]   ;;  %v4843_v3 = vld [vmem:[#allocation2 + $0x2a8] ss:$16 sps:$4 sm:$0xff]  }
  0x67   :  { %1479 = vmatpush1.bf16.msra.mxu0 %v4761_v5  ;;  %1627 = vmatpush1.bf16.msra.mxu1 %v4758_v4  ;;  %v4848_v4 = vld [vmem:[#allocation2 + $0x3c4] ss:$16 sps:$4 sm:$0xff]   ;;  %v4851_v5 = vld [vmem:[#allocation2 + $0x2cc] ss:$16 sps:$4 sm:$0xff]  }
  0x68   :  { %1489 = vmatprep.subr.bf16.mxu0 %v4764_v6  ;;  %1628 = vmatprep.subr.bf16.mxu1 %v4767_v8  ;;  %v4846_v6 = vld [vmem:[#allocation2 + $0x3c0] ss:$16 sps:$4 sm:$0xff]   ;;  %v4854_v8 = vld [vmem:[#allocation2 + $0x3e4] ss:$16 sps:$4 sm:$0xff]  }
  0x6a   :  { %1481 = vmatmul.mubr.bf16.vlgmr.msra.gmra.mrb[0].mxu0 %v5546_v10 }
  0x6b   :  { %1490 = vmatpush1.bf16.msra.mxu0 %v4762_v9  ;;  %1629 = vmatpush1.bf16.msra.mxu1 %v4765_v11  ;;  %v4857_v9 = vld [vmem:[#allocation2 + $0x2ec] ss:$16 sps:$4 sm:$0xff]   ;;  %v4855_v11 = vld [vmem:[#allocation2 + $0x2e8] ss:$16 sps:$4 sm:$0xff]  }
  0x6c   :  { %1491 = vmatprep.subr.bf16.mxu0 %v4770_v12  ;;  %1630 = vmatprep.subr.bf16.mxu1 %v4773_v13  ;;  %v70_v12 = vld [vmem:[%s5907_s0 + $0x10] sm:$0xff] }
  0x6d   :  { %1521 = vmatprep.mubr.bf16.mxu0 %v78_v37  ;;  %v4860_v13 = vld [vmem:[#allocation2 + $0x404] ss:$16 sps:$4 sm:$0xff]  }
  0x6f   :  { %1492 = vmatpush1.bf16.msra.mxu0 %v4768_v14  ;;  %1631 = vmatpush1.bf16.msra.mxu1 %v4771_v15  ;;  %v4863_v14 = vld [vmem:[#allocation2 + $0x30c] ss:$16 sps:$4 sm:$0xff]   ;;  %v4858_v15 = vld [vmem:[#allocation2 + $0x400] ss:$16 sps:$4 sm:$0xff]  }
  0x70   :  { %1493 = vmatprep.subr.bf16.mxu0 %v4776_v16  ;;  %1632 = vmatprep.subr.bf16.mxu1 %v4779_v17  ;;  %v5556_v16 = vpack.c.bf16 %v70_v12, %v70_v12  ;;  %v4861_v17 = vld [vmem:[#allocation2 + $0x308] ss:$16 sps:$4 sm:$0xff]   ;;  %v4942_v12 = vld [vmem:[#allocation2 + $0x5c0] ss:$16 sps:$4 sm:$0xff]  }
  0x73   :  { %1494 = vmatpush1.bf16.msra.mxu0 %v4774_v18  ;;  %1633 = vmatpush1.bf16.msra.mxu1 %v4777_v19  ;;  %v4866_v18 = vld [vmem:[#allocation2 + $0x424] ss:$16 sps:$4 sm:$0xff]   ;;  %v4869_v19 = vld [vmem:[#allocation2 + $0x32c] ss:$16 sps:$4 sm:$0xff]  }
  0x74   :  { %1495 = vmatprep.subr.bf16.mxu0 %v4782_v20  ;;  %1634 = vmatprep.subr.bf16.mxu1 %v4785_v21  ;;  %v73_v20 = vld [vmem:[%s5907_s0 + $0x28] sm:$0xff] }
  0x75   :  { %v5561_v21 = vpack.c.bf16 %v73_v20, %v73_v20  ;;  %v72_v20 = vld [vmem:[%s5907_s0 + $0x20] sm:$0xff] }
  0x77   :  { %1496 = vmatpush1.bf16.msra.mxu0 %v4780_v22  ;;  %1635 = vmatpush1.bf16.msra.mxu1 %v4783_v23  ;;  %v4864_v22 = vld [vmem:[#allocation2 + $0x420] ss:$16 sps:$4 sm:$0xff]   ;;  %v4867_v23 = vld [vmem:[#allocation2 + $0x328] ss:$16 sps:$4 sm:$0xff]  }
  0x78   :  { %1497 = vmatprep.subr.bf16.mxu0 %v4788_v24  ;;  %1636 = vmatprep.subr.bf16.mxu1 %v4791_v25  ;;  %v4872_v24 = vld [vmem:[#allocation2 + $0x444] ss:$16 sps:$4 sm:$0xff]   ;;  %v4875_v25 = vld [vmem:[#allocation2 + $0x34c] ss:$16 sps:$4 sm:$0xff]  }
  0x7b   :  { %1498 = vmatpush1.bf16.msra.mxu0 %v4786_v26  ;;  %1637 = vmatpush1.bf16.msra.mxu1 %v4789_v27  ;;  %v4870_v26 = vld [vmem:[#allocation2 + $0x440] ss:$16 sps:$4 sm:$0xff]   ;;  %v4873_v27 = vld [vmem:[#allocation2 + $0x348] ss:$16 sps:$4 sm:$0xff]  }
  0x7c   :  { %1499 = vmatprep.subr.bf16.mxu0 %v4794_v28  ;;  %1638 = vmatprep.subr.bf16.mxu1 %v4797_v29  ;;  %v4878_v28 = vld [vmem:[#allocation2 + $0x464] ss:$16 sps:$4 sm:$0xff]   ;;  %v4881_v29 = vld [vmem:[#allocation2 + $0x36c] ss:$16 sps:$4 sm:$0xff]  }
  0x7f   :  { %1500 = vmatpush1.bf16.msra.mxu0 %v4792_v30  ;;  %1639 = vmatpush1.bf16.msra.mxu1 %v4795_v31  ;;  %v4876_v30 = vld [vmem:[#allocation2 + $0x460] ss:$16 sps:$4 sm:$0xff]   ;;  %v4879_v31 = vld [vmem:[#allocation2 + $0x368] ss:$16 sps:$4 sm:$0xff]  }
  0x80   :  { %1501 = vmatprep.subr.bf16.mxu0 %v4800_v32  ;;  %1640 = vmatprep.subr.bf16.mxu1 %v4803_v33  ;;  %v4884_v32 = vld [vmem:[#allocation2 + $0x484] ss:$16 sps:$4 sm:$0xff]   ;;  %v4887_v33 = vld [vmem:[#allocation2 + $0x38c] ss:$16 sps:$4 sm:$0xff]  }
  0x83   :  { %1502 = vmatpush1.bf16.msra.mxu0 %v4798_v35  ;;  %1641 = vmatpush1.bf16.msra.mxu1 %v4801_v38  ;;  %v4885_v35 = vld [vmem:[#allocation2 + $0x388] ss:$16 sps:$4 sm:$0xff]   ;;  %v4893_v38 = vld [vmem:[#allocation2 + $0x3ac] ss:$16 sps:$4 sm:$0xff]  }
  0x84   :  { %1503 = vmatprep.subr.bf16.mxu0 %v4806_v39  ;;  %1642 = vmatprep.subr.bf16.mxu1 %v4809_v40  ;;  %v4888_v39 = vld [vmem:[#allocation2 + $0x4a0] ss:$16 sps:$4 sm:$0xff]   ;;  %v4891_v40 = vld [vmem:[#allocation2 + $0x3a8] ss:$16 sps:$4 sm:$0xff]  }
  0x87   :  { %1504 = vmatpush1.bf16.msra.mxu0 %v4804_v41  ;;  %1643 = vmatpush1.bf16.msra.mxu1 %v4807_v42  ;;  %v4896_v41 = vld [vmem:[#allocation2 + $0x4c4] ss:$16 sps:$4 sm:$0xff]   ;;  %v4899_v42 = vld [vmem:[#allocation2 + $0x3cc] ss:$16 sps:$4 sm:$0xff]  }
  0x88   :  { %1505 = vmatprep.subr.bf16.mxu0 %v4812_v43  ;;  %1653 = vmatprep.subr.bf16.mxu1 %v4815_v44  ;;  %v4894_v43 = vld [vmem:[#allocation2 + $0x4c0] ss:$16 sps:$4 sm:$0xff]   ;;  %v4897_v44 = vld [vmem:[#allocation2 + $0x3c8] ss:$16 sps:$4 sm:$0xff]  }
  0x8a   :  { %1645 = vmatmul.mubr.bf16.vlgmr.msra.gmra.mrb[4].mxu1 %v5546_v10  ;;  %v4852_v10 = vld [vmem:[#allocation2 + $0x3e0] ss:$16 sps:$4 sm:$0xff]  }
  0x8b   :  { %1506 = vmatpush1.bf16.msra.mxu0 %v4810_v45  ;;  %1654 = vmatpush1.bf16.msra.mxu1 %v4813_v46  ;;  %v4902_v45 = vld [vmem:[#allocation2 + $0x4e4] ss:$16 sps:$4 sm:$0xff]   ;;  %v4905_v46 = vld [vmem:[#allocation2 + $0x3ec] ss:$16 sps:$4 sm:$0xff]  }
  0x8c   :  { %1507 = vmatprep.subr.bf16.mxu0 %v4818_v47  ;;  %1655 = vmatprep.subr.bf16.mxu1 %v4821_v48  ;;  %v4900_v47 = vld [vmem:[#allocation2 + $0x4e0] ss:$16 sps:$4 sm:$0xff]   ;;  %v4903_v48 = vld [vmem:[#allocation2 + $0x3e8] ss:$16 sps:$4 sm:$0xff]  }
  0x8d   :  { %1685 = vmatprep.mubr.bf16.mxu1 %v78_v37  ;;  %v4890_v37 = vld [vmem:[#allocation2 + $0x4a4] ss:$16 sps:$4 sm:$0xff]  }
  0x8f   :  { %1508 = vmatpush1.bf16.msra.mxu0 %v4816_v49  ;;  %1656 = vmatpush1.bf16.msra.mxu1 %v4819_v50  ;;  %v4908_v49 = vld [vmem:[#allocation2 + $0x504] ss:$16 sps:$4 sm:$0xff]   ;;  %v4911_v50 = vld [vmem:[#allocation2 + $0x40c] ss:$16 sps:$4 sm:$0xff]  }
  0x90   :  { %1509 = vmatprep.subr.bf16.mxu0 %v4824_v51  ;;  %1657 = vmatprep.subr.bf16.mxu1 %v4827_v52  ;;  %v4906_v51 = vld [vmem:[#allocation2 + $0x500] ss:$16 sps:$4 sm:$0xff]   ;;  %v4909_v52 = vld [vmem:[#allocation2 + $0x408] ss:$16 sps:$4 sm:$0xff]  }
  0x93   :  { %1510 = vmatpush1.bf16.msra.mxu0 %v4822_v53  ;;  %1658 = vmatpush1.bf16.msra.mxu1 %v4825_v54  ;;  %v4914_v53 = vld [vmem:[#allocation2 + $0x524] ss:$16 sps:$4 sm:$0xff]   ;;  %v4917_v54 = vld [vmem:[#allocation2 + $0x42c] ss:$16 sps:$4 sm:$0xff]  }
  0x94   :  { %1511 = vmatprep.subr.bf16.mxu0 %v4830_v55  ;;  %1659 = vmatprep.subr.bf16.mxu1 %v4833_v56  ;;  %v4912_v55 = vld [vmem:[#allocation2 + $0x520] ss:$16 sps:$4 sm:$0xff]   ;;  %v4915_v56 = vld [vmem:[#allocation2 + $0x428] ss:$16 sps:$4 sm:$0xff]  }
  0x97   :  { %1512 = vmatpush1.bf16.msra.mxu0 %v4828_v57  ;;  %1660 = vmatpush1.bf16.msra.mxu1 %v4831_v58  ;;  %v4920_v57 = vld [vmem:[#allocation2 + $0x544] ss:$16 sps:$4 sm:$0xff]   ;;  %v4923_v58 = vld [vmem:[#allocation2 + $0x44c] ss:$16 sps:$4 sm:$0xff]  }
  0x98   :  { %1513 = vmatprep.subr.bf16.mxu0 %v4836_v59  ;;  %1661 = vmatprep.subr.bf16.mxu1 %v4839_v60  ;;  %v4918_v59 = vld [vmem:[#allocation2 + $0x540] ss:$16 sps:$4 sm:$0xff]   ;;  %v4921_v60 = vld [vmem:[#allocation2 + $0x448] ss:$16 sps:$4 sm:$0xff]  }
  0x9b   :  { %1514 = vmatpush1.bf16.msra.mxu0 %v4834_v61  ;;  %1662 = vmatpush1.bf16.msra.mxu1 %v4837_v62  ;;  %v4926_v61 = vld [vmem:[#allocation2 + $0x564] ss:$16 sps:$4 sm:$0xff]   ;;  %v4929_v62 = vld [vmem:[#allocation2 + $0x46c] ss:$16 sps:$4 sm:$0xff]  }
  0x9c   :  { %1515 = vmatprep.subr.bf16.mxu0 %v4842_v63  ;;  %1663 = vmatprep.subr.bf16.mxu1 %v4845_v1  ;;  %v4924_v63 = vld [vmem:[#allocation2 + $0x560] ss:$16 sps:$4 sm:$0xff]   ;;  %v4927_v1 = vld [vmem:[#allocation2 + $0x468] ss:$16 sps:$4 sm:$0xff]  }
  0x9f   :  { %1516 = vmatpush1.bf16.msra.mxu0 %v4840_v2  ;;  %1664 = vmatpush1.bf16.msra.mxu1 %v4843_v3  ;;  %v4932_v2 = vld [vmem:[#allocation2 + $0x584] ss:$16 sps:$4 sm:$0xff]   ;;  %v4935_v3 = vld [vmem:[#allocation2 + $0x48c] ss:$16 sps:$4 sm:$0xff]  }
  0xa0   :  { %1517 = vmatprep.subr.bf16.mxu0 %v4848_v4  ;;  %1665 = vmatprep.subr.bf16.mxu1 %v4851_v5  ;;  %v4930_v4 = vld [vmem:[#allocation2 + $0x580] ss:$16 sps:$4 sm:$0xff]   ;;  %v4933_v5 = vld [vmem:[#allocation2 + $0x488] ss:$16 sps:$4 sm:$0xff]  }
  0xa3   :  { %1518 = vmatpush1.bf16.msra.mxu0 %v4846_v6  ;;  %1666 = vmatpush1.bf16.msra.mxu1 %v4849_v7  ;;  %v4938_v6 = vld [vmem:[#allocation2 + $0x5a4] ss:$16 sps:$4 sm:$0xff]   ;;  %v4941_v7 = vld [vmem:[#allocation2 + $0x4ac] ss:$16 sps:$4 sm:$0xff]  }
  0xa4   :  { %1519 = vmatprep.subr.bf16.mxu0 %v4854_v8  ;;  %1667 = vmatprep.subr.bf16.mxu1 %v4857_v9  ;;  %v4936_v8 = vld [vmem:[#allocation2 + $0x5a0] ss:$16 sps:$4 sm:$0xff]   ;;  %v4939_v9 = vld [vmem:[#allocation2 + $0x4a8] ss:$16 sps:$4 sm:$0xff]  }
  0xa7   :  { %1520 = vmatpush1.bf16.msra.mxu0 %v4852_v10  ;;  %1668 = vmatpush1.bf16.msra.mxu1 %v4855_v11  ;;  %v4944_v10 = vld [vmem:[#allocation2 + $0x5c4] ss:$16 sps:$4 sm:$0xff]   ;;  %v4947_v11 = vld [vmem:[#allocation2 + $0x4cc] ss:$16 sps:$4 sm:$0xff]  }
  0xa8   :  { %1530 = vmatprep.subr.bf16.mxu0 %v4860_v13  ;;  %1669 = vmatprep.subr.bf16.mxu1 %v4863_v14  ;;  %v4945_v13 = vld [vmem:[#allocation2 + $0x4c8] ss:$16 sps:$4 sm:$0xff]   ;;  %v4950_v14 = vld [vmem:[#allocation2 + $0x5e4] ss:$16 sps:$4 sm:$0xff]  }
  0xaa   :  { %1522 = vmatmul.mubr.bf16.vlgmr.msra.gmra.mrb[0].mxu0 %v5556_v16 }
  0xab   :  { %1531 = vmatpush1.bf16.msra.mxu0 %v4858_v15  ;;  %1670 = vmatpush1.bf16.msra.mxu1 %v4861_v17  ;;  %v4953_v15 = vld [vmem:[#allocation2 + $0x4ec] ss:$16 sps:$4 sm:$0xff]  }
  0xac   :  { %1532 = vmatprep.subr.bf16.mxu0 %v4866_v18  ;;  %1671 = vmatprep.subr.bf16.mxu1 %v4869_v19  ;;  %v1797_v17 = vld [vmem:[%s5911_s4 + $0x88] sm:$0xff]  ;;  %v4948_v18 = vld [vmem:[#allocation2 + $0x5e0] ss:$16 sps:$4 sm:$0xff]  }
  0xad   :  { %1562 = vmatprep.mubr.bf16.mxu0 %v5561_v21  ;;  %v4951_v19 = vld [vmem:[#allocation2 + $0x4e8] ss:$16 sps:$4 sm:$0xff]  }
  0xaf   :  { %1533 = vmatpush1.bf16.msra.mxu0 %v4864_v22  ;;  %1672 = vmatpush1.bf16.msra.mxu1 %v4867_v23  ;;  %v1780_v22 = vld [vmem:[%s5911_s4] sm:$0xff]  ;;  %v1781_v23 = vld [vmem:[%s5911_s4 + $0x8] sm:$0xff] }
  0xb0   :  { %1534 = vmatprep.subr.bf16.mxu0 %v4872_v24  ;;  %1673 = vmatprep.subr.bf16.mxu1 %v4875_v25  ;;  %v1798_v24 = vld [vmem:[%s5911_s4 + $0x90] sm:$0xff]  ;;  %v1799_v25 = vld [vmem:[%s5911_s4 + $0x98] sm:$0xff] }
  0xb3   :  { %1535 = vmatpush1.bf16.msra.mxu0 %v4870_v26  ;;  %1674 = vmatpush1.bf16.msra.mxu1 %v4873_v27  ;;  %v4954_v27 = vld [vmem:[#allocation2 + $0x508] ss:$16 sps:$4 sm:$0xff]  }
  0xb4   :  { %1536 = vmatprep.subr.bf16.mxu0 %v4878_v28  ;;  %1675 = vmatprep.subr.bf16.mxu1 %v4881_v29  ;;  %v5588_v28 = vpack.c.bf16 %v72_v20, %v72_v20  ;;  %v4959_v29 = vld [vmem:[#allocation2 + $0x52c] ss:$16 sps:$4 sm:$0xff]  }
  0xb5   :  { %v4995_v20 = vld [vmem:[#allocation2 + $0x6ac] ss:$16 sps:$4 sm:$0xff]  }
  0xb7   :  { %1537 = vmatpush1.bf16.msra.mxu0 %v4876_v30  ;;  %1676 = vmatpush1.bf16.msra.mxu1 %v4879_v31  ;;  %v1782_v30 = vld [vmem:[%s5911_s4 + $0x10] sm:$0xff]  ;;  %v1783_v31 = vld [vmem:[%s5911_s4 + $0x18] sm:$0xff] }
  0xb8   :  { %1538 = vmatprep.subr.bf16.mxu0 %v4884_v32  ;;  %1677 = vmatprep.subr.bf16.mxu1 %v4887_v33  ;;  %v4543_v32 = vpack.c.bf16 %v1781_v23, %v1780_v22  ;;  %v1800_v33 = vld [vmem:[%s5911_s4 + $0xa0] sm:$0xff]  ;;  %v4998_v22 = vld [vmem:[#allocation2 + $0x6cc] ss:$16 sps:$4 sm:$0xff]  }
  0xbb   :  { %1539 = vmatpush1.bf16.msra.mxu0 %v4882_v34  ;;  %1678 = vmatpush1.bf16.msra.mxu1 %v4885_v35  ;;  %v1801_v34 = vld [vmem:[%s5911_s4 + $0xa8] sm:$0xff]  ;;  %v4545_v35 = vpack.c.bf16 %v1799_v25, %v1798_v24 }
  0xbc   :  { %1540 = vmatprep.subr.bf16.mxu0 %v4890_v37  ;;  %1679 = vmatprep.subr.bf16.mxu1 %v4893_v38  ;;  %v4957_v37 = vld [vmem:[#allocation2 + $0x528] ss:$16 sps:$4 sm:$0xff]   ;;  %v4962_v38 = vld [vmem:[#allocation2 + $0x54c] ss:$16 sps:$4 sm:$0xff]  }
  0xbd   :  { %v4996_v25 = vld [vmem:[#allocation2 + $0x6c8] ss:$16 sps:$4 sm:$0xff]  }
  0xbf   :  { %1541 = vmatpush1.bf16.msra.mxu0 %v4888_v39  ;;  %1680 = vmatpush1.bf16.msra.mxu1 %v4891_v40  ;;  %v1784_v39 = vld [vmem:[%s5911_s4 + $0x20] sm:$0xff]  ;;  %v1785_v40 = vld [vmem:[%s5911_s4 + $0x28] sm:$0xff] }
  0xc0   :  { %1542 = vmatprep.subr.bf16.mxu0 %v4896_v41  ;;  %1681 = vmatprep.subr.bf16.mxu1 %v4899_v42  ;;  %v4547_v41 = vpack.c.bf16 %v1783_v31, %v1782_v30  ;;  %v1802_v42 = vld [vmem:[%s5911_s4 + $0xb0] sm:$0xff]  ;;  %v1809_v30 = vld [vmem:[%s5911_s4 + $0xe8] sm:$0xff] }
  0xc3   :  { %1543 = vmatpush1.bf16.msra.mxu0 %v4894_v43  ;;  %1682 = vmatpush1.bf16.msra.mxu1 %v4897_v44  ;;  %v1803_v43 = vld [vmem:[%s5911_s4 + $0xb8] sm:$0xff]  ;;  %v4549_v44 = vpack.c.bf16 %v1801_v34, %v1800_v33  ;;  %v1793_v33 = vld [vmem:[%s5911_s4 + $0x68] sm:$0xff] }
  0xc4   :  { %1544 = vmatprep.subr.bf16.mxu0 %v4902_v45  ;;  %1683 = vmatprep.subr.bf16.mxu1 %v4905_v46  ;;  %v4960_v45 = vld [vmem:[#allocation2 + $0x548] ss:$16 sps:$4 sm:$0xff]   ;;  %v4965_v46 = vld [vmem:[#allocation2 + $0x56c] ss:$16 sps:$4 sm:$0xff]  }
  0xc7   :  { %1545 = vmatpush1.bf16.msra.mxu0 %v4900_v47  ;;  %1684 = vmatpush1.bf16.msra.mxu1 %v4903_v48  ;;  %v1786_v47 = vld [vmem:[%s5911_s4 + $0x30] sm:$0xff]  ;;  %v1787_v48 = vld [vmem:[%s5911_s4 + $0x38] sm:$0xff] }
  0xc8   :  { %1546 = vmatprep.subr.bf16.mxu0 %v4908_v49  ;;  %1694 = vmatprep.subr.bf16.mxu1 %v4911_v50  ;;  %v4551_v49 = vpack.c.bf16 %v1785_v40, %v1784_v39  ;;  %v1804_v50 = vld [vmem:[%s5911_s4 + $0xc0] sm:$0xff]  ;;  %v1795_v39 = vld [vmem:[%s5911_s4 + $0x78] sm:$0xff] }
  0xca   :  { %1686 = vmatmul.mubr.bf16.vlgmr.msra.gmra.mrb[4].mxu1 %v5556_v16  ;;  %v1796_v16 = vld [vmem:[%s5911_s4 + $0x80] sm:$0xff] }
  0xcb   :  { %1547 = vmatpush1.bf16.msra.mxu0 %v4906_v51  ;;  %1695 = vmatpush1.bf16.msra.mxu1 %v4909_v52  ;;  %v4541_v26 = vpack.c.bf16 %v1797_v17, %v1796_v16  ;;  %v1805_v51 = vld [vmem:[%s5911_s4 + $0xc8] sm:$0xff]  ;;  %v4553_v52 = vpack.c.bf16 %v1803_v43, %v1802_v42  ;;  %v1812_v43 = vld [vmem:[%s5911_s4 + $0x100] sm:$0xff] }
  0xcc   :  { %1548 = vmatprep.subr.bf16.mxu0 %v4914_v53  ;;  %1696 = vmatprep.subr.bf16.mxu1 %v4917_v54  ;;  %v4963_v53 = vld [vmem:[#allocation2 + $0x568] ss:$16 sps:$4 sm:$0xff]   ;;  %v4968_v54 = vld [vmem:[#allocation2 + $0x58c] ss:$16 sps:$4 sm:$0xff]  }
  0xcd   :  { %1726 = vmatprep.mubr.bf16.mxu1 %v5561_v21  ;;  %v4956_v21 = vld [vmem:[#allocation2 + $0x50c] ss:$16 sps:$4 sm:$0xff]   ;;  %v4987_v17 = vld [vmem:[#allocation2 + $0x668] ss:$16 sps:$4 sm:$0xff]  }
  0xce   :  { %v4989_v16 = vld [vmem:[#allocation2 + $0x66c] ss:$16 sps:$4 sm:$0xff]  }
  0xcf   :  { %1549 = vmatpush1.bf16.msra.mxu0 %v4912_v55  ;;  %1697 = vmatpush1.bf16.msra.mxu1 %v4915_v56  ;;  %v1788_v55 = vld [vmem:[%s5911_s4 + $0x40] sm:$0xff]  ;;  %v1789_v56 = vld [vmem:[%s5911_s4 + $0x48] sm:$0xff] }
  0xd0   :  { %1550 = vmatprep.subr.bf16.mxu0 %v4920_v57  ;;  %1698 = vmatprep.subr.bf16.mxu1 %v4923_v58  ;;  %v4555_v57 = vpack.c.bf16 %v1787_v48, %v1786_v47  ;;  %v1806_v58 = vld [vmem:[%s5911_s4 + $0xd0] sm:$0xff]  ;;  %v1829_v42 = vld [vmem:[%s5911_s4 + $0x188] sm:$0xff]  ;;  %v1831_v47 = vld [vmem:[%s5911_s4 + $0x198] sm:$0xff] }
  0xd3   :  { %1551 = vmatpush1.bf16.msra.mxu0 %v4918_v59  ;;  %1699 = vmatpush1.bf16.msra.mxu1 %v4921_v60  ;;  %v1807_v59 = vld [vmem:[%s5911_s4 + $0xd8] sm:$0xff]  ;;  %v4557_v60 = vpack.c.bf16 %v1805_v51, %v1804_v50  ;;  %v1814_v50 = vld [vmem:[%s5911_s4 + $0x110] sm:$0xff] }
  0xd4   :  { %1552 = vmatprep.subr.bf16.mxu0 %v4926_v61  ;;  %1700 = vmatprep.subr.bf16.mxu1 %v4929_v62  ;;  %v4966_v61 = vld [vmem:[#allocation2 + $0x588] ss:$16 sps:$4 sm:$0xff]   ;;  %v4971_v62 = vld [vmem:[#allocation2 + $0x5ac] ss:$16 sps:$4 sm:$0xff]  }
  0xd5   :  { %v1815_v51 = vld [vmem:[%s5911_s4 + $0x118] sm:$0xff] }
  0xd7   :  { %1553 = vmatpush1.bf16.msra.mxu0 %v4924_v63  ;;  %1701 = vmatpush1.bf16.msra.mxu1 %v4927_v1  ;;  %v1790_v63 = vld [vmem:[%s5911_s4 + $0x50] sm:$0xff]  ;;  %v1791_v1 = vld [vmem:[%s5911_s4 + $0x58] sm:$0xff] }
  0xd8   :  { %1554 = vmatprep.subr.bf16.mxu0 %v4932_v2  ;;  %1702 = vmatprep.subr.bf16.mxu1 %v4935_v3  ;;  %v4559_v2 = vpack.c.bf16 %v1789_v56, %v1788_v55  ;;  %v4561_v3 = vpack.c.bf16 %v1807_v59, %v1806_v58  ;;  %v1816_v56 = vld [vmem:[%s5911_s4 + $0x120] sm:$0xff]  ;;  %v1834_v58 = vld [vmem:[%s5911_s4 + $0x1b0] sm:$0xff]  ;;  %v1835_v59 = vld [vmem:[%s5911_s4 + $0x1b8] sm:$0xff] }
  0xdb   :  { %1555 = vmatpush1.bf16.msra.mxu0 %v4930_v4  ;;  %1703 = vmatpush1.bf16.msra.mxu1 %v4933_v5  ;;  %v4969_v4 = vld [vmem:[#allocation2 + $0x5a8] ss:$16 sps:$4 sm:$0xff]   ;;  %v4974_v5 = vld [vmem:[#allocation2 + $0x5cc] ss:$16 sps:$4 sm:$0xff]  }
  0xdc   :  { %1556 = vmatprep.subr.bf16.mxu0 %v4938_v6  ;;  %1704 = vmatprep.subr.bf16.mxu1 %v4941_v7  ;;  %v4563_v6 = vpack.c.bf16 %v1791_v1, %v1790_v63  ;;  %v4972_v7 = vld [vmem:[#allocation2 + $0x5c8] ss:$16 sps:$4 sm:$0xff]   ;;  %v1836_v1 = vld [vmem:[%s5911_s4 + $0x1c0] sm:$0xff] }
  0xdd   :  { %v1819_v63 = vld [vmem:[%s5911_s4 + $0x138] sm:$0xff] }
  0xdf   :  { %1557 = vmatpush1.bf16.msra.mxu0 %v4936_v8  ;;  %1705 = vmatpush1.bf16.msra.mxu1 %v4939_v9  ;;  %v4977_v8 = vld [vmem:[#allocation2 + $0x5ec] ss:$16 sps:$4 sm:$0xff]   ;;  %v4975_v9 = vld [vmem:[#allocation2 + $0x5e8] ss:$16 sps:$4 sm:$0xff]  }
  0xe0   :  { %1558 = vmatprep.subr.bf16.mxu0 %v4944_v10  ;;  %1706 = vmatprep.subr.bf16.mxu1 %v4947_v11  ;;  %v4980_v10 = vld [vmem:[#allocation2 + $0x60c] ss:$16 sps:$4 sm:$0xff]   ;;  %v4978_v11 = vld [vmem:[#allocation2 + $0x608] ss:$16 sps:$4 sm:$0xff]  }
  0xe3   :  { %1559 = vmatpush1.bf16.msra.mxu0 %v4942_v12  ;;  %1707 = vmatpush1.bf16.msra.mxu1 %v4945_v13  ;;  %v4983_v12 = vld [vmem:[#allocation2 + $0x62c] ss:$16 sps:$4 sm:$0xff]   ;;  %v4981_v13 = vld [vmem:[#allocation2 + $0x628] ss:$16 sps:$4 sm:$0xff]  }
  0xe4   :  { %1560 = vmatprep.subr.bf16.mxu0 %v4950_v14  ;;  %1708 = vmatprep.subr.bf16.mxu1 %v4953_v15  ;;  %v4986_v14 = vld [vmem:[#allocation2 + $0x64c] ss:$16 sps:$4 sm:$0xff]   ;;  %v4984_v15 = vld [vmem:[#allocation2 + $0x648] ss:$16 sps:$4 sm:$0xff]  }
  0xe7   :  { %1561 = vmatpush1.bf16.msra.mxu0 %v4948_v18  ;;  %1709 = vmatpush1.bf16.msra.mxu1 %v4951_v19  ;;  %v4992_v18 = vld [vmem:[#allocation2 + $0x68c] ss:$16 sps:$4 sm:$0xff]   ;;  %v4990_v19 = vld [vmem:[#allocation2 + $0x688] ss:$16 sps:$4 sm:$0xff]  }
  0xe8   :  { %1710 = vmatprep.subr.bf16.mxu1 %v4956_v21  ;;  %4542 = vmatprep.subr.bf16.mxu0 %v4541_v26  ;;  %v4993_v21 = vld [vmem:[#allocation2 + $0x6a8] ss:$16 sps:$4 sm:$0xff]  }
  0xea   :  { %1563 = vmatmul.mubr.bf16.vlgmr.msra.gmra.mrb[0].mxu0 %v5588_v28 }
  0xeb   :  { %1711 = vmatpush1.bf16.msra.mxu1 %v4954_v27  ;;  %4544 = vmatpush3.bf16.msra.mxu0 %v4543_v32  ;;  %v5001_v27 = vld [vmem:[#allocation2 + $0x6ec] ss:$16 sps:$4 sm:$0xff]   ;;  %v1792_v32 = vld [vmem:[%s5911_s4 + $0x60] sm:$0xff] }
  0xec   :  { %1712 = vmatprep.subr.bf16.mxu1 %v4959_v29  ;;  %4546 = vmatprep.subr.bf16.mxu0 %v4545_v35  ;;  %v1808_v29 = vld [vmem:[%s5911_s4 + $0xe0] sm:$0xff]  ;;  %v4567_v34 = vpack.c.bf16 %v1793_v33, %v1792_v32  ;;  %v1811_v35 = vld [vmem:[%s5911_s4 + $0xf8] sm:$0xff] }
  0xed   :  { %v4565_v31 = vpack.c.bf16 %v1809_v30, %v1808_v29 }
  0xef   :  { %1713 = vmatpush1.bf16.msra.mxu1 %v4957_v37  ;;  %4548 = vmatpush3.bf16.msra.mxu0 %v4547_v41  ;;  %v1828_v41 = vld [vmem:[%s5911_s4 + $0x180] sm:$0xff] }
  0xf0   :  { %1714 = vmatprep.subr.bf16.mxu1 %v4962_v38  ;;  %4550 = vmatprep.subr.bf16.mxu0 %v4549_v44  ;;  %v1794_v38 = vld [vmem:[%s5911_s4 + $0x70] sm:$0xff]  ;;  %v4573_v44 = vpack.c.bf16 %v1829_v42, %v1828_v41 }
  0xf1   :  { %v4571_v40 = vpack.c.bf16 %v1795_v39, %v1794_v38 }
  0xf3   :  { %1715 = vmatpush1.bf16.msra.mxu1 %v4960_v45  ;;  %4552 = vmatpush3.bf16.msra.mxu0 %v4551_v49  ;;  %v1813_v45 = vld [vmem:[%s5911_s4 + $0x108] sm:$0xff] }
  0xf4   :  { %1716 = vmatprep.subr.bf16.mxu1 %v4965_v46  ;;  %4554 = vmatprep.subr.bf16.mxu0 %v4553_v52  ;;  %v1830_v46 = vld [vmem:[%s5911_s4 + $0x190] sm:$0xff]  ;;  %v4575_v48 = vpack.c.bf16 %v1813_v45, %v1812_v43  ;;  %v1832_v52 = vld [vmem:[%s5911_s4 + $0x1a0] sm:$0xff] }
  0xf5   :  { %v4577_v49 = vpack.c.bf16 %v1831_v47, %v1830_v46 }
  0xf7   :  { %1717 = vmatpush1.bf16.msra.mxu1 %v4963_v53  ;;  %4556 = vmatpush3.bf16.msra.mxu0 %v4555_v57  ;;  %v1833_v53 = vld [vmem:[%s5911_s4 + $0x1a8] sm:$0xff] }
  0xf8   :  { %1718 = vmatprep.subr.bf16.mxu1 %v4968_v54  ;;  %4558 = vmatprep.subr.bf16.mxu0 %v4557_v60  ;;  %v4579_v54 = vpack.c.bf16 %v1815_v51, %v1814_v50  ;;  %v4581_v55 = vpack.c.bf16 %v1833_v53, %v1832_v52  ;;  %v1817_v57 = vld [vmem:[%s5911_s4 + $0x128] sm:$0xff] }
  0xf9   :  { %v4583_v60 = vpack.c.bf16 %v1817_v57, %v1816_v56 }
  0xfb   :  { %1719 = vmatpush1.bf16.msra.mxu1 %v4966_v61  ;;  %4560 = vmatpush3.bf16.msra.mxu0 %v4559_v2  ;;  %v4585_v61 = vpack.c.bf16 %v1835_v59, %v1834_v58  ;;  %v1837_v2 = vld [vmem:[%s5911_s4 + $0x1c8] sm:$0xff]  ;;  %v4200_v58 = vld [vmem:[%s5912_s5] ss:$0 sm:$0xff] }
  0xfc   :  { %1720 = vmatprep.subr.bf16.mxu1 %v4971_v62  ;;  %4562 = vmatprep.subr.bf16.mxu0 %v4561_v3  ;;  %v1818_v62 = vld [vmem:[%s5911_s4 + $0x130] sm:$0xff] }
  0xfd   :  { %v4587_v3 = vpack.c.bf16 %v1819_v63, %v1818_v62 }
  0xff   :  { %1721 = vmatpush1.bf16.msra.mxu1 %v4969_v4  ;;  %4564 = vmatpush3.bf16.msra.mxu0 %v4563_v6  ;;  %v4589_v4 = vpack.c.bf16 %v1837_v2, %v1836_v1  ;;  %v1821_v6 = vld [vmem:[%s5911_s4 + $0x148] sm:$0xff]  ;;  %v5444_v2 = vmov 1  }
 0x100   :  { %1722 = vmatprep.subr.bf16.mxu1 %v4974_v5  ;;  %4566 = vmatprep.subr.bf16.mxu0 %v4565_v31  ;;  %v1820_v5 = vld [vmem:[%s5911_s4 + $0x140] sm:$0xff] }
 0x101   :  { %v306_v31 = vld [vmem:[%s5910_s3] sm:$0xf]  ;;  %4665 = vset.pattern.permute.xlu0 %v5444_v2 }
 0x103   :  { %1723 = vmatpush1.bf16.msra.mxu1 %v4972_v7  ;;  %4568 = vmatpush3.bf16.msra.mxu0 %v4567_v34  ;;  %v1838_v7 = vld [vmem:[%s5911_s4 + $0x1d0] sm:$0xff] }
 0x104   :  { %1724 = vmatprep.subr.bf16.mxu1 %v4977_v8  ;;  %v1839_v8 = vld [vmem:[%s5911_s4 + $0x1d8] sm:$0xff] }
 0x107   :  { %1725 = vmatpush1.bf16.msra.mxu1 %v4975_v9  ;;  %v4591_v9 = vpack.c.bf16 %v1821_v6, %v1820_v5  ;;  %v5002_v6 = vld [vmem:[#allocation5] ss:$28 sps:$4 sm:$0xff]  }
 0x108   :  { %1735 = vmatprep.subr.bf16.mxu1 %v4980_v10  ;;  %v4593_v10 = vpack.c.bf16 %v1839_v8, %v1838_v7  ;;  %v5004_v7 = vld [vmem:[#allocation5 + $0x4] ss:$28 sps:$4 sm:$0xff]  }
 0x109   :  { %v5005_v8 = vld [vmem:[#allocation5 + $0x8] ss:$28 sps:$4 sm:$0xff]  }
 0x10a   :  { %1727 = vmatmul.mubr.bf16.vlgmr.msra.gmra.mrb[4].mxu1 %v5588_v28  ;;  %v4999_v28 = vld [vmem:[#allocation2 + $0x6e8] ss:$16 sps:$4 sm:$0xff]  }
 0x10b   :  { %1736 = vmatpush1.bf16.msra.mxu1 %v4978_v11  ;;  %1767 = vmatprep.mubr.bf16.mxu1 %v5442_v0  ;;  %v1822_v11 = vld [vmem:[%s5911_s4 + $0x150] sm:$0xff] }
 0x10c   :  { %1737 = vmatprep.subr.bf16.mxu1 %v4983_v12  ;;  %v1823_v12 = vld [vmem:[%s5911_s4 + $0x158] sm:$0xff] }
 0x10f   :  { %1738 = vmatpush1.bf16.msra.mxu1 %v4981_v13  ;;  %v1840_v13 = vld [vmem:[%s5911_s4 + $0x1e0] sm:$0xff] }
 0x110   :  { %1739 = vmatprep.subr.bf16.mxu1 %v4986_v14  ;;  %v1841_v14 = vld [vmem:[%s5911_s4 + $0x1e8] sm:$0xff] }
 0x113   :  { %1740 = vmatpush1.bf16.msra.mxu1 %v4984_v15  ;;  %v4595_v15 = vpack.c.bf16 %v1823_v12, %v1822_v11  ;;  %v5013_v11 = vld [vmem:[#allocation5 + $0x44] ss:$28 sps:$4 sm:$0xff]   ;;  %v5008_v12 = vld [vmem:[#allocation5 + $0x38] ss:$28 sps:$4 sm:$0xff]  }
 0x114   :  { %1741 = vmatprep.subr.bf16.mxu1 %v4989_v16  ;;  %v4597_v16 = vpack.c.bf16 %v1841_v14, %v1840_v13  ;;  %v5011_v14 = vld [vmem:[#allocation5 + $0x40] ss:$28 sps:$4 sm:$0xff]  }
 0x117   :  { %1742 = vmatpush1.bf16.msra.mxu1 %v4987_v17  ;;  %v1824_v17 = vld [vmem:[%s5911_s4 + $0x160] sm:$0xff] }
 0x118   :  { %1743 = vmatprep.subr.bf16.mxu1 %v4992_v18  ;;  %v1825_v18 = vld [vmem:[%s5911_s4 + $0x168] sm:$0xff] }
 0x11b   :  { %1744 = vmatpush1.bf16.msra.mxu1 %v4990_v19  ;;  %v4599_v19 = vpack.c.bf16 %v1825_v18, %v1824_v17  ;;  %v5014_v17 = vld [vmem:[#allocation5 + $0x70] ss:$28 sps:$4 sm:$0xff]   ;;  %v5017_v18 = vld [vmem:[#allocation5 + $0x78] ss:$28 sps:$4 sm:$0xff]  }
 0x11c   :  { %1745 = vmatprep.subr.bf16.mxu1 %v4995_v20  ;;  %v1842_v20 = vld [vmem:[%s5911_s4 + $0x1f0] sm:$0xff] }
 0x11d   :  { %v5647_v23 = vpop.f32.mrb[0].mxu1 }
 0x11e   :  { %v5649_v0 = vpop.f32.mrb[1].mxu1 }
 0x11f   :  { %v1609_v24 = vpop.f32.mrb[2].mxu1  ;;  %1746 = vmatpush1.bf16.msra.mxu1 %v4993_v21  ;;  %v1843_v21 = vld [vmem:[%s5911_s4 + $0x1f8] sm:$0xff] }
 0x120   :  { %v1610_v26 = vpop.f32.mrb[3].mxu1  ;;  %1747 = vmatprep.subr.bf16.mxu1 %v4998_v22  ;;  %v4601_v22 = vpack.c.bf16 %v1843_v21, %v1842_v20  ;;  %v1826_v24 = vld [vmem:[%s5911_s4 + $0x170] sm:$0xff]  ;;  %v5020_v21 = vld [vmem:[#allocation5 + $0xa8] ss:$28 sps:$4 sm:$0xff]  }
 0x121   :  { %v5025_v20 = vld [vmem:[#allocation5 + $0xb4] ss:$28 sps:$4 sm:$0xff]  }
 0x123   :  { %1748 = vmatpush1.bf16.msra.mxu1 %v4996_v25  ;;  %v1827_v25 = vld [vmem:[%s5911_s4 + $0x178] sm:$0xff] }
 0x124   :  { %1749 = vmatprep.subr.bf16.mxu1 %v5001_v27  ;;  %v4603_v26 = vpack.c.bf16 %v1827_v25, %v1826_v24  ;;  %v1993_v27 = vld [vmem:[%s5908_s1] sm:$0xff]  ;;  %v5031_v25 = vld [vmem:[#allocation5 + $0xec] ss:$28 sps:$4 sm:$0xff]  }
 0x125   :  { %1995 = vrot.lane.b32.xlu0 %v1993_v27, %s5443_s17  ;;  %v5028_v24 = vld [vmem:[#allocation5 + $0xe4] ss:$28 sps:$4 sm:$0xff]  }
 0x126   :  { %v5029_v27 = vld [vmem:[#allocation5 + $0xe8] ss:$28 sps:$4 sm:$0xff]  }
 0x127   :  { %1750 = vmatpush1.bf16.msra.mxu1 %v4999_v28  ;;  %v308_v28 = vlaneseq }
 0x128   :  { %4574 = vmatprep.subr.bf16.mxu1 %v4573_v44 }
 0x129   :  { %v5776_v29 = vshrl.u32 %v308_v28, 7  ;;  %v5034_v28 = vld [vmem:[#allocation5 + $0x11c] ss:$28 sps:$4 sm:$0xff]  }
 0x12a   :  { %1768 = vmatmul.mubr.bf16.vlgmr.msra.gmra.mrb[4].mxu1 %v5537_v36  ;;  %v1810_v36 = vld [vmem:[%s5911_s4 + $0xf0] sm:$0xff]  ;;  %s5445_s4 = smov 126  }
 0x12b   :  { %v4569_v37 = vpack.c.bf16 %v1811_v35, %v1810_v36  ;;  %4576 = vmatpush3.bf16.msra.mxu1 %v4575_v48  ;;  %v5779_v30 = vsub.s32 0, %v5776_v29  ;;  %v5785_v32 = vsub.s32 1, %v5776_v29  ;;  %v5792_v45 = vsub.s32 2, %v5776_v29 }
 0x12c   :  { %4578 = vmatprep.subr.bf16.mxu1 %v4577_v49  ;;  %v5795_v46 = vsub.s32 3, %v5776_v29  ;;  %vm2020_vm0 = vcmp.lt.s32.totalorder %v5776_v29, 2 }
 0x12d   :  { %4570 = vmatprep.subr.bf16.mxu0 %v4569_v37  ;;  %v311_v33 = vrot.slane %v306_v31, %v5779_v30  ;;  %v315_v34 = vrot.slane %v306_v31, %v5785_v32  ;;  %v319_v47 = vrot.slane %v306_v31, %v5792_v45 }
 0x12e   :  { %4572 = vmatpush3.bf16.msra.mxu0 %v4571_v40  ;;  %v323_v48 = vrot.slane %v306_v31, %v5795_v46  ;;  %v5037_v31 = vld [vmem:[#allocation5 + $0x124] ss:$28 sps:$4 sm:$0xff]  }
 0x12f   :  { %4580 = vmatpush3.bf16.msra.mxu1 %v4579_v54  ;;  %3585 = vmatprep.subr.bf16.mxu0 %v5004_v7  ;;  %v5085_v7 = vld [vmem:[#allocation5 + $0x2e4] ss:$28 sps:$4 sm:$0xff]  }
 0x130   :  { %4582 = vmatprep.subr.bf16.mxu1 %v4581_v55 }
 0x133   :  { %4584 = vmatpush3.bf16.msra.mxu1 %v4583_v60 }
 0x134   :  { %4586 = vmatprep.subr.bf16.mxu1 %v4585_v61 }
 0x137   :  { %4588 = vmatpush3.bf16.msra.mxu1 %v4587_v3 }
 0x138   :  { %4590 = vmatprep.subr.bf16.mxu1 %v4589_v4 }
 0x13b   :  { %4592 = vmatpush3.bf16.msra.mxu1 %v4591_v9  ;;  %v5007_v9 = vld [vmem:[#allocation5 + $0xc] ss:$28 sps:$4 sm:$0xff]  }
 0x13c   :  { %4594 = vmatprep.subr.bf16.mxu1 %v4593_v10  ;;  %v5010_v10 = vld [vmem:[#allocation5 + $0x3c] ss:$28 sps:$4 sm:$0xff]  }
 0x13f   :  { %4596 = vmatpush3.bf16.msra.mxu1 %v4595_v15  ;;  %v5016_v15 = vld [vmem:[#allocation5 + $0x74] ss:$28 sps:$4 sm:$0xff]  }
 0x140   :  { %4598 = vmatprep.subr.bf16.mxu1 %v4597_v16  ;;  %v5019_v16 = vld [vmem:[#allocation5 + $0x7c] ss:$28 sps:$4 sm:$0xff]  }
 0x143   :  { %4600 = vmatpush3.bf16.msra.mxu1 %v4599_v19  ;;  %v5022_v19 = vld [vmem:[#allocation5 + $0xac] ss:$28 sps:$4 sm:$0xff]  }
 0x144   :  { %4602 = vmatprep.subr.bf16.mxu1 %v4601_v22  ;;  %v5023_v22 = vld [vmem:[#allocation5 + $0xb0] ss:$28 sps:$4 sm:$0xff]  }
 0x147   :  { %4604 = vmatpush3.bf16.msra.mxu1 %v4603_v26  ;;  %v5026_v26 = vld [vmem:[#allocation5 + $0xe0] ss:$28 sps:$4 sm:$0xff]  }
 0x148   :  { %3667 = vmatprep.subr.bf16.mxu1 %v5007_v9  ;;  %v5083_v9 = vld [vmem:[#allocation5 + $0x2e0] ss:$28 sps:$4 sm:$0xff]  }
 0x197   :  { %v1996_v3 = vpop.permute.xlu0 %1995 }
 0x1bd   :  { %v1564_v36 = vpop.f32.mrb[0].mxu0 }
 0x1be   :  { %v4605_v35 = vadd.f32 %v1564_v36, %v311_v33  ;;  %v1566_v37 = vpop.f32.mrb[1].mxu0  ;;  %v5032_v33 = vld [vmem:[#allocation5 + $0x118] ss:$28 sps:$4 sm:$0xff]  }
 0x1bf   :  { %v4607_v38 = vadd.f32 %v1566_v37, %v315_v34  ;;  %v1568_v39 = vpop.f32.mrb[2].mxu0  ;;  %v5035_v34 = vld [vmem:[#allocation5 + $0x120] ss:$28 sps:$4 sm:$0xff]   ;;  %v5040_v36 = vld [vmem:[#allocation5 + $0x154] ss:$28 sps:$4 sm:$0xff]  }
 0x1c0   :  { %v4606_v40 = vadd.f32 %v4605_v35, %v5647_v23  ;;  %v1569_v41 = vpop.f32.mrb[3].mxu0  ;;  %v5043_v35 = vld [vmem:[#allocation5 + $0x15c] ss:$28 sps:$4 sm:$0xff]   ;;  %v5038_v37 = vld [vmem:[#allocation5 + $0x150] ss:$28 sps:$4 sm:$0xff]  }
 0x1c1   :  { %v4608_v42 = vadd.f32 %v4607_v38, %v5649_v0  ;;  %v5041_v38 = vld [vmem:[#allocation5 + $0x158] ss:$28 sps:$4 sm:$0xff]   ;;  %v5046_v39 = vld [vmem:[#allocation5 + $0x18c] ss:$28 sps:$4 sm:$0xff]  }
 0x1c2   :  { %v1776_v44 = vmax.f32 %v4606_v40, 0.0  ;;  %v5049_v40 = vld [vmem:[#allocation5 + $0x194] ss:$28 sps:$4 sm:$0xff]   ;;  %v5044_v41 = vld [vmem:[#allocation5 + $0x188] ss:$28 sps:$4 sm:$0xff]  }
 0x1c3   :  { %v1777_v43 = vmax.f32 %v4608_v42, 0.0  ;;  %v5047_v42 = vld [vmem:[#allocation5 + $0x190] ss:$28 sps:$4 sm:$0xff]  }
 0x1c5   :  { %1915 = vmatprep.mubr.f32.mxu0 %v1777_v43  ;;  %v5052_v43 = vld [vmem:[#allocation5 + $0x1c4] ss:$28 sps:$4 sm:$0xff]  }
 0x1c6   :  { %1916 = vmatmul.mubr.f32.vlgmr.msra.gmra.mrb[4].mxu0 %v1776_v44  ;;  %v5055_v44 = vld [vmem:[#allocation5 + $0x1cc] ss:$28 sps:$4 sm:$0xff]  }
 0x1c7   :  { %3586 = vmatpush1.bf16.msra.mxu0 %v5002_v6  ;;  %v5082_v6 = vld [vmem:[#allocation5 + $0x2dc] ss:$28 sps:$4 sm:$0xff]  }
 0x1c8   :  { %3587 = vmatprep.subr.bf16.mxu0 %v5010_v10 }
 0x1cb   :  { %3588 = vmatpush1.bf16.msra.mxu0 %v5008_v12 }
 0x1cc   :  { %3589 = vmatprep.subr.bf16.mxu0 %v5016_v15 }
 0x1cf   :  { %3590 = vmatpush1.bf16.msra.mxu0 %v5014_v17  ;;  %v5089_v17 = vld [vmem:[#allocation5 + $0x318] ss:$28 sps:$4 sm:$0xff]  }
 0x1d0   :  { %3591 = vmatprep.subr.bf16.mxu0 %v5022_v19  ;;  %v5094_v19 = vld [vmem:[#allocation5 + $0x34c] ss:$28 sps:$4 sm:$0xff]  }
 0x1d3   :  { %3592 = vmatpush1.bf16.msra.mxu0 %v5020_v21 }
 0x1d4   :  { %3593 = vmatprep.subr.bf16.mxu0 %v5028_v24  ;;  %v5095_v24 = vld [vmem:[#allocation5 + $0x350] ss:$28 sps:$4 sm:$0xff]  }
 0x1d7   :  { %3594 = vmatpush1.bf16.msra.mxu0 %v5026_v26  ;;  %v2040_v26 = vld [vmem:[%s5914_s7] sm:$0xf] }
 0x1d8   :  { %3595 = vmatprep.subr.bf16.mxu0 %v5034_v28 }
 0x1db   :  { %3596 = vmatpush1.bf16.msra.mxu0 %v5032_v33 }
 0x1dc   :  { %3597 = vmatprep.subr.bf16.mxu0 %v5040_v36  ;;  %v4202_v36 = vld [vmem:[%s5913_s6 + $0x1] ss:$2 sm:$0xf] }
 0x1df   :  { %3598 = vmatpush1.bf16.msra.mxu0 %v5038_v37  ;;  %v2080_v37 = vrot.slane %v2040_v26, %v5785_v32 }
 0x1e0   :  { %3599 = vmatprep.subr.bf16.mxu0 %v5046_v39 }
 0x1e3   :  { %3600 = vmatpush1.bf16.msra.mxu0 %v5044_v41 }
 0x1e4   :  { %3601 = vmatprep.subr.bf16.mxu0 %v5052_v43 }
 0x1fd   :  { %v1769_v49 = vpop.f32.mrb[4].mxu1 }
 0x1fe   :  { %v4609_v50 = vadd.f32 %v1769_v49, %v319_v47  ;;  %v1771_v23 = vpop.f32.mrb[5].mxu1  ;;  %v5050_v47 = vld [vmem:[#allocation5 + $0x1c0] ss:$28 sps:$4 sm:$0xff]  }
 0x1ff   :  { %v4610_v51 = vadd.f32 %v1771_v23, %v323_v48  ;;  %v1773_v52 = vpop.f32.mrb[6].mxu1  ;;  %v5053_v48 = vld [vmem:[#allocation5 + $0x1c8] ss:$28 sps:$4 sm:$0xff]   ;;  %v5058_v49 = vld [vmem:[#allocation5 + $0x1fc] ss:$28 sps:$4 sm:$0xff]   ;;  %3602 = vmatpush1.bf16.msra.mxu0 %v5050_v47  ;;  %v2111_v47 = vrot.slane %v4202_v36, %v5785_v32 }
 0x200   :  { %v1774_v0 = vpop.f32.mrb[7].mxu1  ;;  %v1778_v54 = vmax.f32 %v4609_v50, 0.0  ;;  %v5061_v50 = vld [vmem:[#allocation5 + $0x204] ss:$28 sps:$4 sm:$0xff]   ;;  %v5056_v23 = vld [vmem:[#allocation5 + $0x1f8] ss:$28 sps:$4 sm:$0xff]   ;;  %3603 = vmatprep.subr.bf16.mxu0 %v5058_v49  ;;  %v2119_v49 = vrot.slane %v4202_v36, %v5795_v46 }
 0x201   :  { %v1779_v53 = vmax.f32 %v4610_v51, 0.0  ;;  %v5059_v51 = vld [vmem:[#allocation5 + $0x200] ss:$28 sps:$4 sm:$0xff]   ;;  %v5064_v52 = vld [vmem:[#allocation5 + $0x234] ss:$28 sps:$4 sm:$0xff]  }
 0x202   :  { %v5067_v0 = vld [vmem:[#allocation5 + $0x23c] ss:$28 sps:$4 sm:$0xff]  }
 0x203   :  { %1985 = vmatprep.mubr.f32.mxu1 %v1779_v53  ;;  %3604 = vmatpush1.bf16.msra.mxu0 %v5056_v23  ;;  %v5062_v53 = vld [vmem:[#allocation5 + $0x230] ss:$28 sps:$4 sm:$0xff]  }
 0x204   :  { %1986 = vmatmul.mubr.f32.vlgmr.msra.gmra.mrb[8].mxu1 %v1778_v54  ;;  %3605 = vmatprep.subr.bf16.mxu0 %v5064_v52  ;;  %v5065_v54 = vld [vmem:[#allocation5 + $0x238] ss:$28 sps:$4 sm:$0xff]  }
 0x205   :  { %3668 = vmatpush1.bf16.msra.mxu1 %v5005_v8  ;;  %v5080_v8 = vld [vmem:[#allocation5 + $0x2d8] ss:$28 sps:$4 sm:$0xff]  }
 0x206   :  { %3669 = vmatprep.subr.bf16.mxu1 %v5013_v11 }
 0x207   :  { %3606 = vmatpush1.bf16.msra.mxu0 %v5062_v53 }
 0x209   :  { %3670 = vmatpush1.bf16.msra.mxu1 %v5011_v14  ;;  %v5091_v14 = vld [vmem:[#allocation5 + $0x31c] ss:$28 sps:$4 sm:$0xff]  }
 0x20a   :  { %3671 = vmatprep.subr.bf16.mxu1 %v5019_v16  ;;  %v5086_v16 = vld [vmem:[#allocation5 + $0x310] ss:$28 sps:$4 sm:$0xff]  }
 0x20d   :  { %3672 = vmatpush1.bf16.msra.mxu1 %v5017_v18 }
 0x20e   :  { %3673 = vmatprep.subr.bf16.mxu1 %v5025_v20  ;;  %v5097_v20 = vld [vmem:[#allocation5 + $0x354] ss:$28 sps:$4 sm:$0xff]  }
 0x211   :  { %3674 = vmatpush1.bf16.msra.mxu1 %v5023_v22  ;;  %v5092_v22 = vld [vmem:[#allocation5 + $0x348] ss:$28 sps:$4 sm:$0xff]  }
 0x212   :  { %3675 = vmatprep.subr.bf16.mxu1 %v5031_v25  ;;  %v2041_v25 = vld [vmem:[%s5913_s6] ss:$2 sm:$0xf] }
 0x213   :  { %v2055_v28 = vrot.slane %v2041_v25, %v5785_v32  ;;  %v2063_v33 = vrot.slane %v2041_v25, %v5795_v46 }
 0x215   :  { %3676 = vmatpush1.bf16.msra.mxu1 %v5029_v27  ;;  %v2051_v27 = vrot.slane %v2041_v25, %v5779_v30 }
 0x216   :  { %3677 = vmatprep.subr.bf16.mxu1 %v5037_v31  ;;  %v2059_v31 = vrot.slane %v2041_v25, %v5792_v45  ;;  %v5130_v25 = vld [vmem:[#allocation5 + $0x49c] ss:$28 sps:$4 sm:$0xff]  }
 0x219   :  { %3678 = vmatpush1.bf16.msra.mxu1 %v5035_v34  ;;  %v2084_v34 = vrot.slane %v2040_v26, %v5792_v45 }
 0x21a   :  { %3679 = vmatprep.subr.bf16.mxu1 %v5043_v35  ;;  %v2076_v35 = vrot.slane %v2040_v26, %v5779_v30 }
 0x21d   :  { %3680 = vmatpush1.bf16.msra.mxu1 %v5041_v38  ;;  %v2088_v38 = vrot.slane %v2040_v26, %v5795_v46  ;;  %v5133_v26 = vld [vmem:[#allocation5 + $0x4a4] ss:$28 sps:$4 sm:$0xff]  }
 0x21e   :  { %3681 = vmatprep.subr.bf16.mxu1 %v5049_v40 }
 0x221   :  { %3682 = vmatpush1.bf16.msra.mxu1 %v5047_v42 }
 0x222   :  { %3683 = vmatprep.subr.bf16.mxu1 %v5055_v44  ;;  %v2107_v44 = vrot.slane %v4202_v36, %v5779_v30 }
 0x225   :  { %3684 = vmatpush1.bf16.msra.mxu1 %v5053_v48  ;;  %v2115_v48 = vrot.slane %v4202_v36, %v5792_v45  ;;  %v5137_v36 = vld [vmem:[#allocation5 + $0x4d8] ss:$28 sps:$4 sm:$0xff]  }
 0x226   :  { %3685 = vmatprep.subr.bf16.mxu1 %v5061_v50 }
 0x229   :  { %3686 = vmatpush1.bf16.msra.mxu1 %v5059_v51 }
 0x22a   :  { %3687 = vmatprep.subr.bf16.mxu1 %v5067_v0 }
 0x22d   :  { %3688 = vmatpush1.bf16.msra.mxu1 %v5065_v54 }
 0x299   :  { %v4459_v55 = vpop.f32.mrb[4].mxu0 }
 0x29a   :  { %v4460_v56 = vpop.f32.mrb[5].mxu0 }
 0x29b   :  { %v4461_v57 = vadd.f32 %v4460_v56, %v4459_v55  ;;  %v5070_v55 = vld [vmem:[#allocation5 + $0x26c] ss:$28 sps:$4 sm:$0xff]   ;;  %v5073_v56 = vld [vmem:[#allocation5 + $0x274] ss:$28 sps:$4 sm:$0xff]  }
 0x29c   :  { %3607 = vmatprep.subr.bf16.mxu0 %v5070_v55  ;;  %3689 = vmatprep.subr.bf16.mxu1 %v5073_v56 }
 0x29d   :  { %v1918_v61 = vadd.f32 %v4461_v57, %v4200_v58  ;;  %v5068_v57 = vld [vmem:[#allocation5 + $0x268] ss:$28 sps:$4 sm:$0xff]   ;;  %v5071_v58 = vld [vmem:[#allocation5 + $0x270] ss:$28 sps:$4 sm:$0xff]  }
 0x29e   :  { %3608 = vmatpush1.bf16.msra.mxu0 %v5068_v57  ;;  %3690 = vmatpush1.bf16.msra.mxu1 %v5071_v58 }
 0x2d7   :  { %v4494_v59 = vpop.f32.mrb[8].mxu1 }
 0x2d8   :  { %v4495_v60 = vpop.f32.mrb[9].mxu1 }
 0x2d9   :  { %v4496_v62 = vadd.f32 %v4495_v60, %v4494_v59  ;;  %v5076_v59 = vld [vmem:[#allocation5 + $0x2a4] ss:$28 sps:$4 sm:$0xff]   ;;  %v5079_v60 = vld [vmem:[#allocation5 + $0x2ac] ss:$28 sps:$4 sm:$0xff]  }
 0x2da   :  { %3609 = vmatprep.subr.bf16.mxu0 %v5076_v59  ;;  %3691 = vmatprep.subr.bf16.mxu1 %v5079_v60 }
 0x2db   :  { %v5802_v63 = vadd.f32 %v4496_v62, %v1918_v61  ;;  %v5074_v61 = vld [vmem:[#allocation5 + $0x2a0] ss:$28 sps:$4 sm:$0xff]   ;;  %v5077_v62 = vld [vmem:[#allocation5 + $0x2a8] ss:$28 sps:$4 sm:$0xff]  }
 0x2dc   :  { %3610 = vmatpush1.bf16.msra.mxu0 %v5074_v61  ;;  %3692 = vmatpush1.bf16.msra.mxu1 %v5077_v62 }
 0x2dd   :  { %v1991_v1 = vmul.f32 1.442695, %v5802_v63  ;;  %v2007_v13 = vmul.f32 %v5802_v63, %v5802_v63  ;;  %3611 = vmatprep.subr.bf16.mxu0 %v5082_v6  ;;  %3693 = vmatprep.subr.bf16.mxu1 %v5085_v7  ;;  %v5098_v6 = vld [vmem:[#allocation5 + $0x380] ss:$28 sps:$4 sm:$0xff]   ;;  %v5101_v7 = vld [vmem:[#allocation5 + $0x388] ss:$28 sps:$4 sm:$0xff]  }
 0x2df   :  { %5322 = vpow2.f32 %v1991_v1  ;;  %v2004_v1 = vmul.f32 2.0, %v5802_v63 }
 0x2e0   :  { %3612 = vmatpush1.bf16.msra.mxu0 %v5080_v8  ;;  %3694 = vmatpush1.bf16.msra.mxu1 %v5083_v9  ;;  %v5106_v9 = vld [vmem:[#allocation5 + $0x3bc] ss:$28 sps:$4 sm:$0xff]  }
 0x2e1   :  { %3695 = vmatprep.subr.bf16.mxu1 %v5091_v14  ;;  %v5112_v14 = vld [vmem:[#allocation5 + $0x3f4] ss:$28 sps:$4 sm:$0xff]  }
 0x2e4   :  { %3696 = vmatpush1.bf16.msra.mxu1 %v5089_v17  ;;  %v5113_v17 = vld [vmem:[#allocation5 + $0x3f8] ss:$28 sps:$4 sm:$0xff]  }
 0x2e5   :  { %3697 = vmatprep.subr.bf16.mxu1 %v5097_v20  ;;  %v5116_v20 = vld [vmem:[#allocation5 + $0x428] ss:$28 sps:$4 sm:$0xff]  }
 0x2e8   :  { %3698 = vmatpush1.bf16.msra.mxu1 %v5095_v24  ;;  %v5127_v24 = vld [vmem:[#allocation5 + $0x46c] ss:$28 sps:$4 sm:$0xff]  }
 0x2e9   :  { %v5323_v4 = vpop.eup %5322 }
 0x2ea   :  { %v1998_v5 = vmul.f32 %v5323_v4, %v1996_v3  ;;  %v2005_v3 = vmul.f32 1.442695, %v2004_v1 }
 0x2ec   :  { %2000 = vrot.lane.b32.xlu0 %v1998_v5, %s5445_s4  ;;  %5324 = vpow2.f32 %v2005_v3 }
 0x2f0   :  { %2009 = vrot.lane.b32.xlu0 %v2007_v13, %s5443_s17  ;;  %v5088_v13 = vld [vmem:[#allocation5 + $0x314] ss:$28 sps:$4 sm:$0xff]  }
 0x2f1   :  { %3613 = vmatprep.subr.bf16.mxu0 %v5088_v13  ;;  %v5107_v13 = vld [vmem:[#allocation5 + $0x3c0] ss:$28 sps:$4 sm:$0xff]  }
 0x2f2   :  { %3614 = vmatpush1.bf16.msra.mxu0 %v5086_v16  ;;  %v5110_v16 = vld [vmem:[#allocation5 + $0x3f0] ss:$28 sps:$4 sm:$0xff]  }
 0x2f3   :  { %3615 = vmatprep.subr.bf16.mxu0 %v5094_v19  ;;  %v5121_v19 = vld [vmem:[#allocation5 + $0x434] ss:$28 sps:$4 sm:$0xff]  }
 0x2f6   :  { %v5325_v10 = vpop.eup %5324  ;;  %3616 = vmatpush1.bf16.msra.mxu0 %v5092_v22  ;;  %v5124_v22 = vld [vmem:[#allocation5 + $0x464] ss:$28 sps:$4 sm:$0xff]  }
 0x35e   :  { %v2001_v4 = vpop.permute.xlu0 %2000 }
 0x35f   :  { %v2003_v5 = vadd.f32 %v2001_v4, %v5802_v63 }
 0x361   :  { %2044 = vperm.xlu1 %4663, %v2003_v5  }
 0x362   :  { %v2010_v11 = vpop.permute.xlu0 %2009 }
 0x363   :  { %v2012_v12 = vadd.f32 %v5325_v10, %v2010_v11  ;;  %v5109_v10 = vld [vmem:[#allocation5 + $0x3c4] ss:$28 sps:$4 sm:$0xff]  }
 0x365   :  { %v2013_v15 = vsub.f32 %v2012_v12, %v5802_v63  ;;  %4664 = vset.pattern.permute.xlu1 %v5444_v2  ;;  %v5100_v63 = vld [vmem:[#allocation5 + $0x384] ss:$28 sps:$4 sm:$0xff]   ;;  %v5103_v2 = vld [vmem:[#allocation5 + $0x38c] ss:$28 sps:$4 sm:$0xff]   ;;  %v5104_v12 = vld [vmem:[#allocation5 + $0x3b8] ss:$28 sps:$4 sm:$0xff]  }
 0x366   :  { %2100 = vperm.xlu1 %4664, %v2003_v5   ;;  %3626 = vmatprep.subr.bf16.mxu0 %v5100_v63  ;;  %v5122_v63 = vld [vmem:[#allocation5 + $0x460] ss:$28 sps:$4 sm:$0xff]  }
 0x367   :  { %v4201_v18 = vadd.f32 -0.5, %v2013_v15  ;;  %3708 = vmatprep.subr.bf16.mxu1 %v5103_v2  ;;  %v5115_v15 = vld [vmem:[#allocation5 + $0x3fc] ss:$28 sps:$4 sm:$0xff]   ;;  %v5125_v2 = vld [vmem:[#allocation5 + $0x468] ss:$28 sps:$4 sm:$0xff]  }
 0x369   :  { %v2021_v21 = vsel %vm2020_vm0, %v4201_v18, 0.0  ;;  %v5118_v18 = vld [vmem:[#allocation5 + $0x42c] ss:$28 sps:$4 sm:$0xff]  }
 0x36a   :  { %2023 = vrot.lane.b32.xlu1 %v2021_v21, %s5445_s4  ;;  %v5119_v21 = vld [vmem:[#allocation5 + $0x430] ss:$28 sps:$4 sm:$0xff]  }
 0x3e0   :  { %v2045_v39 = vpop.permute.xlu1 %2044 }
 0x3e1   :  { %v2068_v40 = vmul.f32 %v2051_v27, %v2045_v39  ;;  %v2069_v41 = vmul.f32 %v2055_v28, %v2045_v39  ;;  %v2070_v42 = vmul.f32 %v2059_v31, %v2045_v39  ;;  %v2071_v43 = vmul.f32 %v2063_v33, %v2045_v39  ;;  %v5128_v27 = vld [vmem:[#allocation5 + $0x498] ss:$28 sps:$4 sm:$0xff]   ;;  %v5131_v28 = vld [vmem:[#allocation5 + $0x4a0] ss:$28 sps:$4 sm:$0xff]   ;;  %v5143_v39 = vld [vmem:[#allocation5 + $0x510] ss:$28 sps:$4 sm:$0xff]  }
 0x3e2   :  { %v5136_v31 = vld [vmem:[#allocation5 + $0x4d4] ss:$28 sps:$4 sm:$0xff]   ;;  %v5139_v33 = vld [vmem:[#allocation5 + $0x4dc] ss:$28 sps:$4 sm:$0xff]  }
 0x3e3   :  { %v2095_v50 = vadd.f32 %v2084_v34, %v2070_v42  ;;  %v2093_v23 = vadd.f32 %v2076_v35, %v2068_v40  ;;  %v2094_v51 = vadd.f32 %v2080_v37, %v2069_v41  ;;  %v2096_v52 = vadd.f32 %v2088_v38, %v2071_v43  ;;  %v5134_v34 = vld [vmem:[#allocation5 + $0x4d0] ss:$28 sps:$4 sm:$0xff]   ;;  %v5140_v38 = vld [vmem:[#allocation5 + $0x508] ss:$28 sps:$4 sm:$0xff]   ;;  %v5146_v42 = vld [vmem:[#allocation5 + $0x540] ss:$28 sps:$4 sm:$0xff]  }
 0x3e4   :  { %v5142_v35 = vld [vmem:[#allocation5 + $0x50c] ss:$28 sps:$4 sm:$0xff]   ;;  %v5145_v37 = vld [vmem:[#allocation5 + $0x514] ss:$28 sps:$4 sm:$0xff]   ;;  %v5148_v40 = vld [vmem:[#allocation5 + $0x544] ss:$28 sps:$4 sm:$0xff]  }
 0x3e5   :  { %v2101_v0 = vpop.permute.xlu1 %2100  ;;  %v5151_v41 = vld [vmem:[#allocation5 + $0x54c] ss:$28 sps:$4 sm:$0xff]  }
 0x3e6   :  { %v2124_v53 = vmul.f32 %v2107_v44, %v2101_v0  ;;  %v2125_v54 = vmul.f32 %v2111_v47, %v2101_v0  ;;  %v2126_v55 = vmul.f32 %v2115_v48, %v2101_v0  ;;  %v2127_v56 = vmul.f32 %v2119_v49, %v2101_v0  ;;  %v5149_v43 = vld [vmem:[#allocation5 + $0x548] ss:$28 sps:$4 sm:$0xff]   ;;  %v5154_v44 = vld [vmem:[#allocation5 + $0x57c] ss:$28 sps:$4 sm:$0xff]  }
 0x3e7   :  { %v5157_v47 = vld [vmem:[#allocation5 + $0x584] ss:$28 sps:$4 sm:$0xff]   ;;  %v5152_v48 = vld [vmem:[#allocation5 + $0x578] ss:$28 sps:$4 sm:$0xff]   ;;  %v5166_v0 = vld [vmem:[#allocation5 + $0x5ec] ss:$28 sps:$4 sm:$0xff]  }
 0x3e8   :  { %v2128_v57 = vadd.f32 %v2124_v53, %v2093_v23  ;;  %v2129_v58 = vadd.f32 %v2125_v54, %v2094_v51  ;;  %v5837_v59 = vadd.f32 %v2126_v55, %v2095_v50  ;;  %v2131_v60 = vadd.f32 %v2127_v56, %v2096_v52  ;;  %v5155_v49 = vld [vmem:[#allocation5 + $0x580] ss:$28 sps:$4 sm:$0xff]   ;;  %v5160_v50 = vld [vmem:[#allocation5 + $0x5b4] ss:$28 sps:$4 sm:$0xff]   ;;  %v5164_v54 = vld [vmem:[#allocation5 + $0x5e8] ss:$28 sps:$4 sm:$0xff]  }
 0x3e9   :  { %v2024_v61 = vpop.permute.xlu1 %2023  ;;  %v5163_v23 = vld [vmem:[#allocation5 + $0x5bc] ss:$28 sps:$4 sm:$0xff]   ;;  %v5158_v51 = vld [vmem:[#allocation5 + $0x5b0] ss:$28 sps:$4 sm:$0xff]   ;;  %v5172_v56 = vld [vmem:[#allocation5 + $0x624] ss:$28 sps:$4 sm:$0xff]  }
 0x3ea   :  { %v2027_v62 = vsel %vm2026_vm1, %v2024_v61, 0.0  ;;  %v2133_v1 = vmax.f32 %v2129_v58, 0.0  ;;  %v2132_v3 = vmax.f32 %v2128_v57, 0.0  ;;  %v2135_v4 = vmax.f32 %v2131_v60, 0.0  ;;  %v5161_v52 = vld [vmem:[#allocation5 + $0x5b8] ss:$28 sps:$4 sm:$0xff]  }
 0x3eb   :  { %2028 = vadd.xlane.f32.xlu0 %v2027_v62  ;;  %v5169_v53 = vld [vmem:[#allocation5 + $0x5f4] ss:$28 sps:$4 sm:$0xff]   ;;  %v5175_v57 = vld [vmem:[#allocation5 + $0x62c] ss:$28 sps:$4 sm:$0xff]   ;;  %v5170_v58 = vld [vmem:[#allocation5 + $0x620] ss:$28 sps:$4 sm:$0xff]  }
 0x3ec   :  { %v5839_v5 = vpack.c.bf16 %v2133_v1, %v2133_v1  ;;  %v5841_v8 = vpack.c.bf16 %v2132_v3, %v2132_v3  ;;  %v5847_v11 = vpack.c.bf16 %v2135_v4, %v2135_v4  ;;  %v5167_v55 = vld [vmem:[#allocation5 + $0x5f0] ss:$28 sps:$4 sm:$0xff]   ;;  %v5173_v60 = vld [vmem:[#allocation5 + $0x628] ss:$28 sps:$4 sm:$0xff]   ;;  %v5178_v61 = vld [vmem:[#allocation5 + $0x65c] ss:$28 sps:$4 sm:$0xff]  }
 0x3ed   :  { %v5181_v62 = vld [vmem:[#allocation5 + $0x664] ss:$28 sps:$4 sm:$0xff]   ;;  %v5176_v1 = vld [vmem:[#allocation5 + $0x658] ss:$28 sps:$4 sm:$0xff]  }
 0x3ee   :  { %3617 = vmatprep.mubr.bf16.mxu0 %v5839_v5  ;;  %3699 = vmatprep.mubr.bf16.mxu1 %v5839_v5  ;;  %v5179_v3 = vld [vmem:[#allocation5 + $0x660] ss:$28 sps:$4 sm:$0xff]   ;;  %v5184_v4 = vld [vmem:[#allocation5 + $0x694] ss:$28 sps:$4 sm:$0xff]  }
 0x3ef   :  { %3618 = vmatmul.mubr.bf16.vlgmr.msra.gmra.mrb[8].mxu0 %v5841_v8  ;;  %3700 = vmatmul.mubr.bf16.vlgmr.msra.gmra.mrb[12].mxu1 %v5841_v8 }
 0x3f0   :  { %3627 = vmatpush1.bf16.msra.mxu0 %v5098_v6  ;;  %3709 = vmatpush1.bf16.msra.mxu1 %v5101_v7  ;;  %v5187_v6 = vld [vmem:[#allocation5 + $0x69c] ss:$28 sps:$4 sm:$0xff]   ;;  %v5182_v7 = vld [vmem:[#allocation5 + $0x690] ss:$28 sps:$4 sm:$0xff]  }
 0x3f1   :  { %3658 = vmatprep.mubr.bf16.mxu0 %v5847_v11  ;;  %3740 = vmatprep.mubr.bf16.mxu1 %v5847_v11 }
 0x3f2   :  { %3628 = vmatprep.subr.bf16.mxu0 %v5106_v9  ;;  %3710 = vmatprep.subr.bf16.mxu1 %v5109_v10  ;;  %v5185_v9 = vld [vmem:[#allocation5 + $0x698] ss:$28 sps:$4 sm:$0xff]   ;;  %v5190_v10 = vld [vmem:[#allocation5 + $0x6cc] ss:$28 sps:$4 sm:$0xff]  }
 0x3f4   :  { %3629 = vmatpush1.bf16.msra.mxu0 %v5104_v12  ;;  %3711 = vmatpush1.bf16.msra.mxu1 %v5107_v13  ;;  %v5193_v12 = vld [vmem:[#allocation5 + $0x6d4] ss:$28 sps:$4 sm:$0xff]   ;;  %v5188_v13 = vld [vmem:[#allocation5 + $0x6c8] ss:$28 sps:$4 sm:$0xff]  }
 0x3f5   :  { %3630 = vmatprep.subr.bf16.mxu0 %v5112_v14  ;;  %3712 = vmatprep.subr.bf16.mxu1 %v5115_v15  ;;  %v5191_v14 = vld [vmem:[#allocation5 + $0x6d0] ss:$28 sps:$4 sm:$0xff]   ;;  %v2134_v15 = vmax.f32 %v5837_v59, 0.0  ;;  %v5199_v59 = vld [vmem:[#allocation5 + $0x48] ss:$28 sps:$4 sm:$0xff]  }
 0x3f8   :  { %3631 = vmatpush1.bf16.msra.mxu0 %v5110_v16  ;;  %3713 = vmatpush1.bf16.msra.mxu1 %v5113_v17  ;;  %v5196_v16 = vld [vmem:[#allocation5 + $0x14] ss:$28 sps:$4 sm:$0xff]  }
 0x3f9   :  { %3632 = vmatprep.subr.bf16.mxu0 %v5118_v18  ;;  %3714 = vmatprep.subr.bf16.mxu1 %v5121_v19  ;;  %v5197_v17 = vld [vmem:[#allocation5 + $0x1d8] ss:$28 sps:$4 sm:$0xff]   ;;  %v5194_v18 = vld [vmem:[#allocation5 + $0x10] ss:$28 sps:$4 sm:$0xff]   ;;  %v5852_v19 = vpack.c.bf16 %v2134_v15, %v2134_v15 }
 0x3fa   :  { %v5263_v15 = vld [vmem:[#allocation5 + $0x4b0] ss:$28 sps:$4 sm:$0xff]  }
 0x3fc   :  { %3633 = vmatpush1.bf16.msra.mxu0 %v5116_v20  ;;  %3715 = vmatpush1.bf16.msra.mxu1 %v5119_v21  ;;  %v5198_v20 = vld [vmem:[#allocation5 + $0x18] ss:$28 sps:$4 sm:$0xff]   ;;  %v5201_v21 = vld [vmem:[#allocation5 + $0x4c] ss:$28 sps:$4 sm:$0xff]  }
 0x3fd   :  { %3634 = vmatprep.subr.bf16.mxu0 %v5124_v22  ;;  %3716 = vmatprep.subr.bf16.mxu1 %v5127_v24  ;;  %v5202_v22 = vld [vmem:[#allocation5 + $0x210] ss:$28 sps:$4 sm:$0xff]  }
 0x3fe   :  { %v5203_v24 = vld [vmem:[#allocation5 + $0x50] ss:$28 sps:$4 sm:$0xff]  }
 0x400   :  { %3635 = vmatpush1.bf16.msra.mxu0 %v5122_v63  ;;  %3717 = vmatpush1.bf16.msra.mxu1 %v5125_v2  ;;  %v5206_v63 = vld [vmem:[#allocation5 + $0x84] ss:$28 sps:$4 sm:$0xff]  }
 0x401   :  { %3636 = vmatprep.subr.bf16.mxu0 %v5130_v25  ;;  %3718 = vmatprep.subr.bf16.mxu1 %v5133_v26  ;;  %v5207_v2 = vld [vmem:[#allocation5 + $0x248] ss:$28 sps:$4 sm:$0xff]   ;;  %v5204_v25 = vld [vmem:[#allocation5 + $0x80] ss:$28 sps:$4 sm:$0xff]  }
 0x402   :  { %v5208_v26 = vld [vmem:[#allocation5 + $0x88] ss:$28 sps:$4 sm:$0xff]  }
 0x404   :  { %3637 = vmatpush1.bf16.msra.mxu0 %v5128_v27  ;;  %3719 = vmatpush1.bf16.msra.mxu1 %v5131_v28  ;;  %v5211_v27 = vld [vmem:[#allocation5 + $0xbc] ss:$28 sps:$4 sm:$0xff]  }
 0x405   :  { %3638 = vmatprep.subr.bf16.mxu0 %v5136_v31  ;;  %3720 = vmatprep.subr.bf16.mxu1 %v5139_v33  ;;  %v5212_v28 = vld [vmem:[#allocation5 + $0x280] ss:$28 sps:$4 sm:$0xff]   ;;  %v5209_v31 = vld [vmem:[#allocation5 + $0xb8] ss:$28 sps:$4 sm:$0xff]  }
 0x406   :  { %v5213_v33 = vld [vmem:[#allocation5 + $0xc0] ss:$28 sps:$4 sm:$0xff]  }
 0x408   :  { %3639 = vmatpush1.bf16.msra.mxu0 %v5134_v34  ;;  %3721 = vmatpush1.bf16.msra.mxu1 %v5137_v36  ;;  %v5216_v34 = vld [vmem:[#allocation5 + $0xf4] ss:$28 sps:$4 sm:$0xff]  }
 0x409   :  { %3640 = vmatprep.subr.bf16.mxu0 %v5142_v35  ;;  %3722 = vmatprep.subr.bf16.mxu1 %v5145_v37  ;;  %v5214_v36 = vld [vmem:[#allocation5 + $0xf0] ss:$28 sps:$4 sm:$0xff]   ;;  %v5218_v35 = vld [vmem:[#allocation5 + $0xf8] ss:$28 sps:$4 sm:$0xff]  }
 0x40a   :  { %v5221_v37 = vld [vmem:[#allocation5 + $0x12c] ss:$28 sps:$4 sm:$0xff]  }
 0x40c   :  { %3641 = vmatpush1.bf16.msra.mxu0 %v5140_v38  ;;  %3723 = vmatpush1.bf16.msra.mxu1 %v5143_v39  ;;  %v5222_v38 = vld [vmem:[#allocation5 + $0x2f0] ss:$28 sps:$4 sm:$0xff]   ;;  %v5219_v39 = vld [vmem:[#allocation5 + $0x128] ss:$28 sps:$4 sm:$0xff]  }
 0x40d   :  { %3642 = vmatprep.subr.bf16.mxu0 %v5148_v40  ;;  %3724 = vmatprep.subr.bf16.mxu1 %v5151_v41  ;;  %v5223_v40 = vld [vmem:[#allocation5 + $0x130] ss:$28 sps:$4 sm:$0xff]   ;;  %v5226_v41 = vld [vmem:[#allocation5 + $0x164] ss:$28 sps:$4 sm:$0xff]  }
 0x410   :  { %3643 = vmatpush1.bf16.msra.mxu0 %v5146_v42  ;;  %3725 = vmatpush1.bf16.msra.mxu1 %v5149_v43  ;;  %v5227_v42 = vld [vmem:[#allocation5 + $0x328] ss:$28 sps:$4 sm:$0xff]   ;;  %v5224_v43 = vld [vmem:[#allocation5 + $0x160] ss:$28 sps:$4 sm:$0xff]  }
 0x411   :  { %3644 = vmatprep.subr.bf16.mxu0 %v5154_v44  ;;  %3726 = vmatprep.subr.bf16.mxu1 %v5157_v47  ;;  %v5228_v44 = vld [vmem:[#allocation5 + $0x168] ss:$28 sps:$4 sm:$0xff]   ;;  %v5231_v47 = vld [vmem:[#allocation5 + $0x19c] ss:$28 sps:$4 sm:$0xff]  }
 0x414   :  { %3645 = vmatpush1.bf16.msra.mxu0 %v5152_v48  ;;  %3727 = vmatpush1.bf16.msra.mxu1 %v5155_v49  ;;  %v5232_v48 = vld [vmem:[#allocation5 + $0x360] ss:$28 sps:$4 sm:$0xff]   ;;  %v5229_v49 = vld [vmem:[#allocation5 + $0x198] ss:$28 sps:$4 sm:$0xff]  }
 0x415   :  { %3646 = vmatprep.subr.bf16.mxu0 %v5160_v50  ;;  %3728 = vmatprep.subr.bf16.mxu1 %v5163_v23  ;;  %v5233_v50 = vld [vmem:[#allocation5 + $0x1a0] ss:$28 sps:$4 sm:$0xff]   ;;  %v5236_v23 = vld [vmem:[#allocation5 + $0x1d4] ss:$28 sps:$4 sm:$0xff]  }
 0x418   :  { %3647 = vmatpush1.bf16.msra.mxu0 %v5158_v51  ;;  %3729 = vmatpush1.bf16.msra.mxu1 %v5161_v52  ;;  %v5237_v51 = vld [vmem:[#allocation5 + $0x558] ss:$28 sps:$4 sm:$0xff]   ;;  %v5234_v52 = vld [vmem:[#allocation5 + $0x1d0] ss:$28 sps:$4 sm:$0xff]  }
 0x419   :  { %3648 = vmatprep.subr.bf16.mxu0 %v5166_v0  ;;  %3730 = vmatprep.subr.bf16.mxu1 %v5169_v53  ;;  %v5238_v0 = vld [vmem:[#allocation5 + $0x398] ss:$28 sps:$4 sm:$0xff]   ;;  %v5241_v53 = vld [vmem:[#allocation5 + $0x20c] ss:$28 sps:$4 sm:$0xff]  }
 0x41c   :  { %3649 = vmatpush1.bf16.msra.mxu0 %v5164_v54  ;;  %3731 = vmatpush1.bf16.msra.mxu1 %v5167_v55  ;;  %v5242_v54 = vld [vmem:[#allocation5 + $0x590] ss:$28 sps:$4 sm:$0xff]   ;;  %v5239_v55 = vld [vmem:[#allocation5 + $0x208] ss:$28 sps:$4 sm:$0xff]  }
 0x41d   :  { %3650 = vmatprep.subr.bf16.mxu0 %v5172_v56  ;;  %3732 = vmatprep.subr.bf16.mxu1 %v5175_v57  ;;  %v5243_v56 = vld [vmem:[#allocation5 + $0x3d0] ss:$28 sps:$4 sm:$0xff]   ;;  %v5246_v57 = vld [vmem:[#allocation5 + $0x244] ss:$28 sps:$4 sm:$0xff]  }
 0x420   :  { %3651 = vmatpush1.bf16.msra.mxu0 %v5170_v58  ;;  %3733 = vmatpush1.bf16.msra.mxu1 %v5173_v60  ;;  %v5247_v58 = vld [vmem:[#allocation5 + $0x5c8] ss:$28 sps:$4 sm:$0xff]   ;;  %v5244_v60 = vld [vmem:[#allocation5 + $0x240] ss:$28 sps:$4 sm:$0xff]  }
 0x421   :  { %3652 = vmatprep.subr.bf16.mxu0 %v5178_v61  ;;  %3734 = vmatprep.subr.bf16.mxu1 %v5181_v62  ;;  %v5248_v61 = vld [vmem:[#allocation5 + $0x408] ss:$28 sps:$4 sm:$0xff]   ;;  %v5251_v62 = vld [vmem:[#allocation5 + $0x27c] ss:$28 sps:$4 sm:$0xff]  }
 0x424   :  { %3653 = vmatpush1.bf16.msra.mxu0 %v5176_v1  ;;  %3735 = vmatpush1.bf16.msra.mxu1 %v5179_v3  ;;  %v5252_v1 = vld [vmem:[#allocation5 + $0x600] ss:$28 sps:$4 sm:$0xff]   ;;  %v5249_v3 = vld [vmem:[#allocation5 + $0x278] ss:$28 sps:$4 sm:$0xff]  }
 0x425   :  { %3654 = vmatprep.subr.bf16.mxu0 %v5184_v4  ;;  %3736 = vmatprep.subr.bf16.mxu1 %v5187_v6  ;;  %v5253_v4 = vld [vmem:[#allocation5 + $0x440] ss:$28 sps:$4 sm:$0xff]   ;;  %v5256_v6 = vld [vmem:[#allocation5 + $0x2b4] ss:$28 sps:$4 sm:$0xff]  }
 0x428   :  { %3655 = vmatpush1.bf16.msra.mxu0 %v5182_v7  ;;  %3737 = vmatpush1.bf16.msra.mxu1 %v5185_v9  ;;  %v5257_v7 = vld [vmem:[#allocation5 + $0x638] ss:$28 sps:$4 sm:$0xff]   ;;  %v5254_v9 = vld [vmem:[#allocation5 + $0x2b0] ss:$28 sps:$4 sm:$0xff]  }
 0x429   :  { %3656 = vmatprep.subr.bf16.mxu0 %v5190_v10  ;;  %3738 = vmatprep.subr.bf16.mxu1 %v5193_v12  ;;  %v5258_v10 = vld [vmem:[#allocation5 + $0x478] ss:$28 sps:$4 sm:$0xff]   ;;  %v5261_v12 = vld [vmem:[#allocation5 + $0x2ec] ss:$28 sps:$4 sm:$0xff]  }
 0x42c   :  { %3657 = vmatpush1.bf16.msra.mxu0 %v5188_v13  ;;  %3739 = vmatpush1.bf16.msra.mxu1 %v5191_v14  ;;  %v5262_v13 = vld [vmem:[#allocation5 + $0x670] ss:$28 sps:$4 sm:$0xff]   ;;  %v5259_v14 = vld [vmem:[#allocation5 + $0x2e8] ss:$28 sps:$4 sm:$0xff]  }
 0x42d   :  { %3749 = vmatprep.subr.bf16.mxu0 %v5196_v16  ;;  %4497 = vmatprep.subr.bf16.mxu1 %v5197_v17  ;;  %v5266_v16 = vld [vmem:[#allocation5 + $0x324] ss:$28 sps:$4 sm:$0xff]  }
 0x42e   :  { %v5267_v17 = vld [vmem:[#allocation5 + $0x6a8] ss:$28 sps:$4 sm:$0xff]  }
 0x42f   :  { %3659 = vmatmul.mubr.bf16.vlgmr.msra.gmra.mrb[8].mxu0 %v5852_v19  ;;  %3741 = vmatmul.mubr.bf16.vlgmr.msra.gmra.mrb[12].mxu1 %v5852_v19 }
 0x430   :  { %3750 = vmatpush1.bf16.msra.mxu0 %v5194_v18  ;;  %3781 = vmatprep.mubr.bf16.mxu0 %v5839_v5  ;;  %v5264_v18 = vld [vmem:[#allocation5 + $0x320] ss:$28 sps:$4 sm:$0xff]  }
 0x431   :  { %4498 = vmatpush3.bf16.msra.mxu1 %v5198_v20  ;;  %3863 = vmatprep.mubr.bf16.mxu1 %v5839_v5  ;;  %v5217_v5 = vld [vmem:[#allocation5 + $0x2b8] ss:$28 sps:$4 sm:$0xff]   ;;  %v5268_v20 = vld [vmem:[#allocation5 + $0x4e8] ss:$28 sps:$4 sm:$0xff]  }
 0x432   :  { %3751 = vmatprep.subr.bf16.mxu0 %v5201_v21  ;;  %4499 = vmatprep.subr.bf16.mxu1 %v5202_v22  ;;  %v5271_v21 = vld [vmem:[#allocation5 + $0x35c] ss:$28 sps:$4 sm:$0xff]  }
 0x433   :  { %v5272_v22 = vld [vmem:[#allocation5 + $0x6e0] ss:$28 sps:$4 sm:$0xff]  }
 0x434   :  { %3752 = vmatpush1.bf16.msra.mxu0 %v5199_v59  ;;  %v5269_v59 = vld [vmem:[#allocation5 + $0x358] ss:$28 sps:$4 sm:$0xff]  }
 0x435   :  { %4500 = vmatpush3.bf16.msra.mxu1 %v5203_v24  ;;  %3753 = vmatprep.subr.bf16.mxu0 %v5206_v63  ;;  %v5273_v24 = vld [vmem:[#allocation5 + $0x520] ss:$28 sps:$4 sm:$0xff]   ;;  %v5276_v63 = vld [vmem:[#allocation5 + $0x394] ss:$28 sps:$4 sm:$0xff]  }
 0x436   :  { %4501 = vmatprep.subr.bf16.mxu1 %v5207_v2  ;;  %v5274_v2 = vld [vmem:[#allocation5 + $0x390] ss:$28 sps:$4 sm:$0xff]  }
 0x438   :  { %3754 = vmatpush1.bf16.msra.mxu0 %v5204_v25  ;;  %v5279_v25 = vld [vmem:[#allocation5 + $0x3cc] ss:$28 sps:$4 sm:$0xff]  }
 0x439   :  { %4502 = vmatpush3.bf16.msra.mxu1 %v5208_v26  ;;  %3755 = vmatprep.subr.bf16.mxu0 %v5211_v27  ;;  %v5277_v26 = vld [vmem:[#allocation5 + $0x3c8] ss:$28 sps:$4 sm:$0xff]  }
 0x43a   :  { %4503 = vmatprep.subr.bf16.mxu1 %v5212_v28  ;;  %v5282_v27 = vld [vmem:[#allocation5 + $0x404] ss:$28 sps:$4 sm:$0xff]  }
 0x43b   :  { %v5280_v28 = vld [vmem:[#allocation5 + $0x400] ss:$28 sps:$4 sm:$0xff]  }
 0x43c   :  { %3756 = vmatpush1.bf16.msra.mxu0 %v5209_v31  ;;  %v5285_v31 = vld [vmem:[#allocation5 + $0x43c] ss:$28 sps:$4 sm:$0xff]  }
 0x43d   :  { %4504 = vmatpush3.bf16.msra.mxu1 %v5213_v33  ;;  %3757 = vmatprep.subr.bf16.mxu0 %v5216_v34  ;;  %v5283_v34 = vld [vmem:[#allocation5 + $0x438] ss:$28 sps:$4 sm:$0xff]  }
 0x43e   :  { %4505 = vmatprep.subr.bf16.mxu1 %v5217_v5 }
 0x440   :  { %3758 = vmatpush1.bf16.msra.mxu0 %v5214_v36  ;;  %v5288_v36 = vld [vmem:[#allocation5 + $0x474] ss:$28 sps:$4 sm:$0xff]  }
 0x441   :  { %4506 = vmatpush3.bf16.msra.mxu1 %v5218_v35  ;;  %3759 = vmatprep.subr.bf16.mxu0 %v5221_v37 }
 0x442   :  { %4507 = vmatprep.subr.bf16.mxu1 %v5222_v38  ;;  %v5291_v38 = vld [vmem:[#allocation5 + $0x4ac] ss:$28 sps:$4 sm:$0xff]  }
 0x444   :  { %3760 = vmatpush1.bf16.msra.mxu0 %v5219_v39 }
 0x445   :  { %4508 = vmatpush3.bf16.msra.mxu1 %v5223_v40  ;;  %3761 = vmatprep.subr.bf16.mxu0 %v5226_v41  ;;  %v5294_v41 = vld [vmem:[#allocation5 + $0x4e4] ss:$28 sps:$4 sm:$0xff]  }
 0x446   :  { %4509 = vmatprep.subr.bf16.mxu1 %v5227_v42 }
 0x448   :  { %3762 = vmatpush1.bf16.msra.mxu0 %v5224_v43  ;;  %v5292_v43 = vld [vmem:[#allocation5 + $0x4e0] ss:$28 sps:$4 sm:$0xff]  }
 0x449   :  { %4510 = vmatpush3.bf16.msra.mxu1 %v5228_v44  ;;  %3763 = vmatprep.subr.bf16.mxu0 %v5231_v47  ;;  %v5297_v44 = vld [vmem:[#allocation5 + $0x51c] ss:$28 sps:$4 sm:$0xff]  }
 0x44a   :  { %4511 = vmatprep.subr.bf16.mxu1 %v5232_v48  ;;  %v5295_v47 = vld [vmem:[#allocation5 + $0x518] ss:$28 sps:$4 sm:$0xff]  }
 0x44b   :  { %v5300_v48 = vld [vmem:[#allocation5 + $0x554] ss:$28 sps:$4 sm:$0xff]  }
 0x44c   :  { %3764 = vmatpush1.bf16.msra.mxu0 %v5229_v49  ;;  %v5298_v49 = vld [vmem:[#allocation5 + $0x550] ss:$28 sps:$4 sm:$0xff]  }
 0x44d   :  { %4512 = vmatpush3.bf16.msra.mxu1 %v5233_v50  ;;  %3765 = vmatprep.subr.bf16.mxu0 %v5236_v23  ;;  %v5303_v50 = vld [vmem:[#allocation5 + $0x58c] ss:$28 sps:$4 sm:$0xff]  }
 0x44e   :  { %4519 = vmatprep.subr.bf16.mxu1 %v5237_v51  ;;  %v5301_v23 = vld [vmem:[#allocation5 + $0x588] ss:$28 sps:$4 sm:$0xff]  }
 0x44f   :  { %v5306_v51 = vld [vmem:[#allocation5 + $0x5c4] ss:$28 sps:$4 sm:$0xff]  }
 0x450   :  { %3864 = vmatmul.mubr.bf16.vlgmr.msra.gmra.mrb[16].mxu1 %v5841_v8  ;;  %3766 = vmatpush1.bf16.msra.mxu0 %v5234_v52  ;;  %v5304_v52 = vld [vmem:[#allocation5 + $0x5c0] ss:$28 sps:$4 sm:$0xff]  }
 0x451   :  { %4520 = vmatpush3.bf16.msra.mxu1 %v5238_v0  ;;  %3903 = vmatprep.mubr.bf16.mxu1 %v5847_v11  ;;  %v5309_v0 = vld [vmem:[#allocation5 + $0x5fc] ss:$28 sps:$4 sm:$0xff]  }
 0x452   :  { %3767 = vmatprep.subr.bf16.mxu0 %v5241_v53  ;;  %4521 = vmatprep.subr.bf16.mxu1 %v5242_v54  ;;  %v5307_v53 = vld [vmem:[#allocation5 + $0x5f8] ss:$28 sps:$4 sm:$0xff]  }
 0x453   :  { %v5312_v54 = vld [vmem:[#allocation5 + $0x634] ss:$28 sps:$4 sm:$0xff]  }
 0x454   :  { %3768 = vmatpush1.bf16.msra.mxu0 %v5239_v55  ;;  %v5310_v55 = vld [vmem:[#allocation5 + $0x630] ss:$28 sps:$4 sm:$0xff]  }
 0x455   :  { %4522 = vmatpush3.bf16.msra.mxu1 %v5243_v56  ;;  %3769 = vmatprep.subr.bf16.mxu0 %v5246_v57  ;;  %v5315_v56 = vld [vmem:[#allocation5 + $0x66c] ss:$28 sps:$4 sm:$0xff]  }
 0x456   :  { %4523 = vmatprep.subr.bf16.mxu1 %v5247_v58  ;;  %v5313_v57 = vld [vmem:[#allocation5 + $0x668] ss:$28 sps:$4 sm:$0xff]  }
 0x457   :  { %v5318_v58 = vld [vmem:[#allocation5 + $0x6a4] ss:$28 sps:$4 sm:$0xff]  }
 0x458   :  { %3770 = vmatpush1.bf16.msra.mxu0 %v5244_v60  ;;  %v5316_v60 = vld [vmem:[#allocation5 + $0x6a0] ss:$28 sps:$4 sm:$0xff]  }
 0x459   :  { %4524 = vmatpush3.bf16.msra.mxu1 %v5248_v61  ;;  %3771 = vmatprep.subr.bf16.mxu0 %v5251_v62  ;;  %v5321_v61 = vld [vmem:[#allocation5 + $0x6dc] ss:$28 sps:$4 sm:$0xff]  }
 0x45a   :  { %4525 = vmatprep.subr.bf16.mxu1 %v5252_v1  ;;  %v5319_v62 = vld [vmem:[#allocation5 + $0x6d8] ss:$28 sps:$4 sm:$0xff]  }
 0x45c   :  { %3772 = vmatpush1.bf16.msra.mxu0 %v5249_v3  ;;  %v5867_v3 = vld [vmem:[%s5916_s9] sm:$0xff]  ;;  %s5446_s9 = smov [#allocation8]  }
 0x45d   :  { %4526 = vmatpush3.bf16.msra.mxu1 %v5253_v4  ;;  %3773 = vmatprep.subr.bf16.mxu0 %v5256_v6  ;;  %v2401_v4 = vrot.slane %v5867_v3, %v5779_v30  ;;  %v2409_v6 = vrot.slane %v5867_v3, %v5792_v45  ;;  %s3962_s8 = sshll.u32 %s5446_s9, 4  ;;  %s3963_s8 = int_to_ptr.vmem [resolvable:$true] %s3962_s8 }
 0x45e   :  { %4527 = vmatprep.subr.bf16.mxu1 %v5257_v7  ;;  %v2405_v7 = vrot.slane %v5867_v3, %v5785_v32  ;;  %s5384_s25 = scalar_lea.vmem %s3963_s8, 16  ;;  %s5388_s26 = scalar_lea.vmem %s3963_s8, 32 }
 0x45f   :  { %p5385_p2 = scmp.ne.s32.totalorder %s3963_s8, %s5384_s25  ;;  %p5389_p3 = scmp.lt.s32.totalorder %s3963_s8, %s3963_s8 }
 0x460   :  { %3774 = vmatpush1.bf16.msra.mxu0 %v5254_v9  ;;  %p5390_p4 = scmp.lt.s32.totalorder %s5388_s26, %s5384_s25 }
 0x461   :  { %4528 = vmatpush3.bf16.msra.mxu1 %v5258_v10  ;;  %3775 = vmatprep.subr.bf16.mxu0 %v5261_v12 }
 0x462   :  { %4529 = vmatprep.subr.bf16.mxu1 %v5262_v13  ;;  %p5391_p5 = por %p5390_p4, %p5389_p3 }
 0x464   :  { %3776 = vmatpush1.bf16.msra.mxu0 %v5259_v14  ;;  %p5392_p6 = pnand %p5391_p5, %p5385_p2 }
 0x465   :  { %4530 = vmatpush3.bf16.msra.mxu1 %v5263_v15  ;;  %3777 = vmatprep.subr.bf16.mxu0 %v5266_v16 }
 0x466   :  { %4531 = vmatprep.subr.bf16.mxu1 %v5267_v17 }
 0x468   :  { %3778 = vmatpush1.bf16.msra.mxu0 %v5264_v18 }
 0x469   :  { %4532 = vmatpush3.bf16.msra.mxu1 %v5268_v20  ;;  %3779 = vmatprep.subr.bf16.mxu0 %v5271_v21 }
 0x46a   :  { %4533 = vmatprep.subr.bf16.mxu1 %v5272_v22 }
 0x46c   :  { %3780 = vmatpush1.bf16.msra.mxu0 %v5269_v59 }
 0x46d   :  { %4534 = vmatpush3.bf16.msra.mxu1 %v5273_v24  ;;  %3790 = vmatprep.subr.bf16.mxu0 %v5276_v63 }
 0x46f   :  { %3782 = vmatmul.mubr.bf16.vlgmr.msra.gmra.mrb[12].mxu0 %v5841_v8  ;;  %v5286_v8 = vld [vmem:[#allocation5 + $0x470] ss:$28 sps:$4 sm:$0xff]  }
 0x470   :  { %3904 = vmatmul.mubr.bf16.vlgmr.msra.gmra.mrb[20].mxu1 %v5852_v19  ;;  %3791 = vmatpush1.bf16.msra.mxu0 %v5274_v2 }
 0x471   :  { %3822 = vmatprep.mubr.bf16.mxu0 %v5847_v11  ;;  %3792 = vmatprep.subr.bf16.mxu0 %v5279_v25  ;;  %v5289_v11 = vld [vmem:[#allocation5 + $0x4a8] ss:$28 sps:$4 sm:$0xff]  }
 0x474   :  { %3793 = vmatpush1.bf16.msra.mxu0 %v5277_v26 }
 0x475   :  { %3794 = vmatprep.subr.bf16.mxu0 %v5282_v27 }
 0x478   :  { %3795 = vmatpush1.bf16.msra.mxu0 %v5280_v28  ;;  %v2029_v33 = vpop.xlane.xlu0 %2028 }
 0x479   :  { %v2030_v5 = vrot.slane %v2029_v33, 4  ;;  %3796 = vmatprep.subr.bf16.mxu0 %v5285_v31 }
 0x47b   :  { %v2031_v35 = vadd.f32 %v2030_v5, %v2029_v33 }
 0x47c   :  { %3797 = vmatpush1.bf16.msra.mxu0 %v5283_v34 }
 0x47d   :  { %v2032_v37 = vrot.slane %v2031_v35, 2  ;;  %3798 = vmatprep.subr.bf16.mxu0 %v5288_v36 }
 0x47f   :  { %v2033_v39 = vadd.f32 %v2032_v37, %v2031_v35 }
 0x480   :  { %3799 = vmatpush1.bf16.msra.mxu0 %v5286_v8 }
 0x481   :  { %3800 = vmatprep.subr.bf16.mxu0 %v5291_v38  ;;  %v2034_v40 = vrot.slane %v2033_v39, 1 }
 0x483   :  { %v2035_v42 = vadd.f32 %v2034_v40, %v2033_v39 }
 0x484   :  { %3801 = vmatpush1.bf16.msra.mxu0 %v5289_v11 }
 0x485   :  { %4649 = vpush %v2035_v42  ;;  %3802 = vmatprep.subr.bf16.mxu0 %v5294_v41 }
 0x488   :  { %3803 = vmatpush1.bf16.msra.mxu0 %v5292_v43 }
 0x489   :  { %3804 = vmatprep.subr.bf16.mxu0 %v5297_v44 }
 0x48c   :  { %3805 = vmatpush1.bf16.msra.mxu0 %v5295_v47 }
 0x48d   :  { %3806 = vmatprep.subr.bf16.mxu0 %v5300_v48 }
 0x490   :  { %3807 = vmatpush1.bf16.msra.mxu0 %v5298_v49 }
 0x491   :  { %3808 = vmatprep.subr.bf16.mxu0 %v5303_v50 }
 0x494   :  { %3809 = vmatpush1.bf16.msra.mxu0 %v5301_v23 }
 0x495   :  { %3810 = vmatprep.subr.bf16.mxu0 %v5306_v51 }
 0x498   :  { %3811 = vmatpush1.bf16.msra.mxu0 %v5304_v52 }
 0x499   :  { %3812 = vmatprep.subr.bf16.mxu0 %v5309_v0 }
 0x49c   :  { %3813 = vmatpush1.bf16.msra.mxu0 %v5307_v53 }
 0x49d   :  { %3814 = vmatprep.subr.bf16.mxu0 %v5312_v54 }
 0x4a0   :  { %3815 = vmatpush1.bf16.msra.mxu0 %v5310_v55 }
 0x4a1   :  { %3816 = vmatprep.subr.bf16.mxu0 %v5315_v56 }
 0x4a4   :  { %3817 = vmatpush1.bf16.msra.mxu0 %v5313_v57 }
 0x4a5   :  { %3818 = vmatprep.subr.bf16.mxu0 %v5318_v58 }
 0x4a8   :  { %3819 = vmatpush1.bf16.msra.mxu0 %v5316_v60 }
 0x4a9   :  { %3820 = vmatprep.subr.bf16.mxu0 %v5321_v61 }
 0x4ac   :  { %3821 = vmatpush1.bf16.msra.mxu0 %v5319_v62 }
 0x4af   :  { %3823 = vmatmul.mubr.bf16.vlgmr.msra.gmra.mrb[12].mxu0 %v5852_v19  ;;  %v2413_v19 = vrot.slane %v5867_v3, %v5795_v46 }
 0x4b6   :  { %s4650_s6 = spop %4649 }
 0x4b7   :  { %v2037_v1 = vstv %s4650_s6 }
 0x4b8   :  { %2039 = vst.msk [vmem:[#allocation8] sm:$0x1] %vm2038_vm2, %v2037_v1 }
 0x502   :  { %v3660_v9 = vpop.f32.mrb[8].mxu0  ;;  %v3742_v10 = vpop.f32.mrb[12].mxu1 }
 0x503   :  { %v4611_v12 = vadd.f32 %v3660_v9, %v2401_v4  ;;  %v4613_v13 = vadd.f32 %v3742_v10, %v2409_v6  ;;  %v3662_v14 = vpop.f32.mrb[9].mxu0  ;;  %v3744_v15 = vpop.f32.mrb[13].mxu1 }
 0x504   :  { %v4612_v16 = vadd.f32 %v3662_v14, %v2405_v7  ;;  %v4614_v17 = vadd.f32 %v3744_v15, %v2413_v19  ;;  %v3664_v18 = vpop.f32.mrb[10].mxu0  ;;  %v3746_v20 = vpop.f32.mrb[14].mxu1 }
 0x505   :  { %v3911_v30 = vmul.f32 0.5, %v4611_v12  ;;  %v3913_v21 = vmul.f32 0.5, %v4613_v13  ;;  %v3665_v22 = vpop.f32.mrb[11].mxu0  ;;  %v3747_v45 = vpop.f32.mrb[15].mxu1 }
 0x506   :  { %v3912_v59 = vmul.f32 0.5, %v4612_v16  ;;  %v3914_v24 = vmul.f32 0.5, %v4614_v17 }
 0x507   :  { %5326 = vtanh.f32 %v3911_v30 }
 0x508   :  { %5328 = vtanh.f32 %v3913_v21 }
 0x509   :  { %5330 = vtanh.f32 %v3912_v59 }
 0x50a   :  { %5332 = vtanh.f32 %v3914_v24 }
 0x511   :  { %v5327_v32 = vpop.eup %5326 }
 0x512   :  { %v5329_v46 = vpop.eup %5328  ;;  %v3925_v63 = vadd.f32 1.0, %v5327_v32 }
 0x513   :  { %v5331_v2 = vpop.eup %5330  ;;  %v3927_v25 = vadd.f32 1.0, %v5329_v46 }
 0x514   :  { %v5333_v26 = vpop.eup %5332  ;;  %v3932_v27 = vmul.f32 0.5, %v3925_v63  ;;  %v3926_v28 = vadd.f32 1.0, %v5331_v2 }
 0x515   :  { %v3934_v31 = vmul.f32 0.5, %v3927_v25  ;;  %v3928_v33 = vadd.f32 1.0, %v5333_v26 }
 0x516   :  { %3939 = vst [vmem:[#allocation7] sm:$0xff] %v3932_v27  ;;  %v3933_v34 = vmul.f32 0.5, %v3926_v28 }
 0x517   :  { %3941 = vst [vmem:[#allocation7 + $0x10] sm:$0xff] %v3934_v31  ;;  %v3935_v5 = vmul.f32 0.5, %v3928_v33 }
 0x518   :  { %3940 = vst [vmem:[#allocation7 + $0x8] sm:$0xff] %v3933_v34 }
 0x519   :  { %3942 = vst [vmem:[#allocation7 + $0x18] sm:$0xff] %v3935_v5 }
 0x51a   :  { %5395 = shalt.err (!%p5392_p6)
}
 0x51b   :  { %s5396_s0 = scalar_lea.hbm %s5918_s11, 16 }
 0x51c   :  { %p5397_p7 = scmp.ne.s32.totalorder %s5918_s11, %s5396_s0  ;;  %p5400_p8 = scmp.lt.u32.totalorder %s5396_s0, %s5918_s11 }
 0x51e   :  { %p5402_p9 = pnand %p5400_p8, %p5397_p7 }
 0x520   :  { %5405 = shalt.err (!%p5402_p9)
}
 0x521   :  { %3965 = dma.vmem_to_hbm [thread:$0]  %s3963_s8, 16, %s5918_s11, [#allocation9]   ;;  %v2424_v39 = vsub.s32 6, %v5776_v29  ;;  %v2416_v52 = vsub.s32 4, %v5776_v29  ;;  %v2420_v0 = vsub.s32 5, %v5776_v29 }
 0x522   :  { %s5447_s11 = smov [#allocation7]  }
 0x523   :  { %v4513_v36 = vpop.f32.mrb[16].mxu1  ;;  %v2425_v11 = vrot.slane %v5867_v3, %v2424_v39  ;;  %v2417_v53 = vrot.slane %v5867_v3, %v2416_v52  ;;  %v2421_v54 = vrot.slane %v5867_v3, %v2420_v0  ;;  %s3952_s16 = sshll.u32 %s5447_s11, 4  ;;  %s3953_s16 = int_to_ptr.vmem [resolvable:$true] %s3952_s16 }
 0x524   :  { %v4514_v35 = vpop.f32.mrb[17].mxu1  ;;  %s5406_s17 = scalar_lea.vmem %s3953_s16, 896  ;;  %p5411_p11 = scmp.lt.s32.totalorder %s3953_s16, %s3953_s16 }
 0x525   :  { %v4515_v8 = vadd.f32 %v4514_v35, %v4513_v36  ;;  %v4516_v37 = vpop.f32.mrb[18].mxu1  ;;  %p5407_p10 = scmp.ne.s32.totalorder %s3953_s16, %s5406_s17  ;;  %p5412_p12 = scmp.lt.s32.totalorder %s5406_s17, %s5406_s17 }
 0x526   :  { %v4517_v38 = vpop.f32.mrb[19].mxu1 }
 0x527   :  { %v3866_v42 = vadd.f32 %v4515_v8, %v2425_v11  ;;  %p5413_p13 = por %p5412_p12, %p5411_p11 }
 0x529   :  { %p5414_p0 = pnand %p5413_p13, %p5407_p10 }
 0x543   :  { %v4535_v40 = vpop.f32.mrb[20].mxu1 }
 0x544   :  { %v4536_v41 = vpop.f32.mrb[21].mxu1 }
 0x545   :  { %v4537_v43 = vadd.f32 %v4536_v41, %v4535_v40  ;;  %v4538_v44 = vpop.f32.mrb[22].mxu1 }
 0x546   :  { %v4539_v47 = vpop.f32.mrb[23].mxu1 }
 0x547   :  { %v3906_v48 = vadd.f32 %v4537_v43, %v3866_v42 }
 0x549   :  { %v3917_v49 = vmul.f32 0.5, %v3906_v48 }
 0x54b   :  { %5334 = vtanh.f32 %v3917_v49 }
 0x555   :  { %v5335_v50 = vpop.eup %5334 }
 0x556   :  { %v3931_v23 = vadd.f32 1.0, %v5335_v50 }
 0x558   :  { %v3938_v51 = vmul.f32 0.5, %v3931_v23 }
 0x55a   :  { %3945 = vst [vmem:[#allocation7 + $0x30] sm:$0xff] %v3938_v51 }
 0x582   :  { %v3824_v55 = vpop.f32.mrb[12].mxu0 }
 0x583   :  { %v4615_v56 = vadd.f32 %v3824_v55, %v2417_v53  ;;  %v3826_v57 = vpop.f32.mrb[13].mxu0 }
 0x584   :  { %v4616_v58 = vadd.f32 %v3826_v57, %v2421_v54  ;;  %v3828_v60 = vpop.f32.mrb[14].mxu0 }
 0x585   :  { %v3915_v61 = vmul.f32 0.5, %v4615_v56  ;;  %v3829_v62 = vpop.f32.mrb[15].mxu0 }
 0x586   :  { %v3916_v1 = vmul.f32 0.5, %v4616_v58 }
 0x587   :  { %5336 = vtanh.f32 %v3915_v61 }
 0x588   :  { %5338 = vtanh.f32 %v3916_v1 }
 0x591   :  { %v5337_v4 = vpop.eup %5336 }
 0x592   :  { %v5339_v6 = vpop.eup %5338  ;;  %v3929_v7 = vadd.f32 1.0, %v5337_v4 }
 0x593   :  { %v3930_v29 = vadd.f32 1.0, %v5339_v6 }
 0x594   :  { %v3936_v19 = vmul.f32 0.5, %v3929_v7 }
 0x595   :  { %v3937_v9 = vmul.f32 0.5, %v3930_v29 }
 0x596   :  { %3943 = vst [vmem:[#allocation7 + $0x20] sm:$0xff] %v3936_v19 }
 0x597   :  { %3944 = vst [vmem:[#allocation7 + $0x28] sm:$0xff] %v3937_v9 }
 0x598   :  { %5417 = shalt.err (!%p5414_p0)
}
 0x599   :  { %s5418_s1 = scalar_lea.hbm %s5917_s10, 896 }
 0x59a   :  { %p5419_p1 = scmp.ne.s32.totalorder %s5917_s10, %s5418_s1  ;;  %p5422_p2 = scmp.lt.u32.totalorder %s5418_s1, %s5917_s10 }
 0x59c   :  { %p5424_p3 = pnand %p5422_p2, %p5419_p1 }
 0x59e   :  { %5427 = shalt.err (!%p5424_p3)
}
 0x59f   :  { %3955 = dma.vmem_to_hbm [thread:$0]  %s3953_s16, 896, %s5917_s10, [#allocation4]  }
 0x5a0   :  { %5432 = dma.done.wait [#allocation4], 896  }
 0x5a1   :  { %5433 = vsyncadd [#allocation4], 4294966400 }
 0x5a2   :  { %5434 = dma.done.wait [#allocation9], 16  }
 0x5a3   :  { %5435 = vsyncadd [#allocation9], 4294967280 }
 0x5a4   :  { %3972 = vsyncpa [#allocation3], 1 }
 0x5a5   :  { %3973 = vsyncpa [#allocation6], 1 }
 0x5a6   :  { %3974 = vsyncpa [#allocation4], 1 }
 0x5a7   :  { %3975 = vsyncpa [#allocation9], 1 }

</bundles_post_ra>
